<compile_context>
chip_gen: v7x
topology: tpu7x:2x2x1
jax: 0.10.0
libtpu: 0.0.40
codegen_flags: <defaults>
</compile_context>

<pallas_src>
import functools

import jax
import jax.numpy as jnp
from jax.experimental import pallas as pl
from jax.experimental.pallas import tpu as pltpu

NUM_CLASSES = 10
IN_FEATURES = 3 * 32 * 32      # 3072, already a multiple of 128
H1 = 300
H2 = 100

# Lane-dense padded widths (multiples of 128).
H1_PAD = 384
H2_PAD = 128
OUT_PAD = 128

DEFAULT_TILE_B = 512           # sweepable 256-1024; sized for v7x 64 MiB VMEM


def _round_up(n, m):
    return (n + m - 1) // m * m


def mlp_cifar_kernel(x_ref, w1_ref, b1_ref, w2_ref, b2_ref, w3_ref, b3_ref,
                     o_ref):
    """Fused 3-layer MLP on one batch tile: ReLU(x W1 + b1) -> ReLU -> W3.

    Weights arrive pre-transposed to (in, out), z-gates already folded in,
    and zero-padded to lane-dense widths. Matmul operands are bf16, the MXU
    accumulates in f32.
    """
    cdt = w1_ref.dtype                       # compute dtype (bf16)
    x = x_ref[...].astype(cdt)

    # fc1 + ReLU
    h1 = jnp.dot(x, w1_ref[...], preferred_element_type=jnp.float32)
    h1 = jnp.maximum(h1 + b1_ref[...], 0.0)

    # fc2 + ReLU
    h2 = jnp.dot(h1.astype(cdt), w2_ref[...], preferred_element_type=jnp.float32)
    h2 = jnp.maximum(h2 + b2_ref[...], 0.0)

    # fc3 (no activation); lane-dense (padded to 128) store
    y = jnp.dot(h2.astype(cdt), w3_ref[...], preferred_element_type=jnp.float32)
    o_ref[...] = (y + b3_ref[...]).astype(o_ref.dtype)


def prepare_params(params, compute_dtype=jnp.bfloat16):
    """One-time (cache me!) weight transform: fold z, transpose, pad, cast.

    Returns (w1, b1, w2, b2, w3, b3) with weights shaped (in_pad, out_pad) in
    `compute_dtype` and biases shaped (1, out_pad) in f32.
    """
    def prep(z, w, b, in_pad, out_pad):
        out_f, in_f = w.shape
        # (x * z) @ w.T == x @ (z[:, None] * w.T)  -> fold gate into the weight.
        w_eff = w.T * z[:, None]
        w_p = jnp.zeros((in_pad, out_pad), jnp.float32).at[:in_f, :out_f].set(w_eff)
        b_p = jnp.zeros((1, out_pad), jnp.float32).at[0, :out_f].set(b)
        return w_p.astype(compute_dtype), b_p

    (z1, w1, b1), (z2, w2, b2), (z3, w3, b3) = params
    w1p, b1p = prep(z1, w1, b1, IN_FEATURES, H1_PAD)
    w2p, b2p = prep(z2, w2, b2, H1_PAD, H2_PAD)
    w3p, b3p = prep(z3, w3, b3, H2_PAD, OUT_PAD)
    return (w1p, b1p, w2p, b2p, w3p, b3p)


@functools.partial(jax.jit, static_argnames=("tile_b",))
def mlp_cifar_forward(x_nchw, prepared, tile_b=DEFAULT_TILE_B):
    """x_nchw: (B, 3, 32, 32) float32. Returns (B, NUM_CLASSES) float32."""
    w1, b1, w2, b2, w3, b3 = prepared
    B = x_nchw.shape[0]

    # Flatten exactly like torch .view(-1, 3*32*32) (row-major over C,H,W).
    x = x_nchw.reshape(B, IN_FEATURES)

    # Batch tile: multiple of 8 sublanes, capped at tile_b; pad ragged batch.
    tb = min(tile_b, _round_up(B, 8))
    b_pad = _round_up(B, tb)
    if b_pad != B:
        x = jnp.pad(x, ((0, b_pad - B), (0, 0)))
    grid = (b_pad // tb,)

    # VMEM budget: double-buffered x/out tiles + resident weights + headroom.
    w_itemsize = jnp.dtype(w1.dtype).itemsize
    weight_bytes = (IN_FEATURES * H1_PAD + H1_PAD * H2_PAD + H2_PAD * OUT_PAD) * w_itemsize
    vmem_limit = (2 * tb * IN_FEATURES * 4        # x tile (f32), double-buffered
                  + 2 * tb * OUT_PAD * 4          # out tile (f32), double-buffered
                  + 2 * weight_bytes              # resident bf16 weights (+buffer)
                  + (8 << 20))                    # h1/h2 intermediates + scratch
    vmem_limit = int(min(vmem_limit, 48 << 20))

    const = lambda i: (0, 0)                      # weights stay resident across tiles
    out = pl.pallas_call(
        mlp_cifar_kernel,
        out_shape=jax.ShapeDtypeStruct((b_pad, OUT_PAD), jnp.float32),
        grid=grid,
        in_specs=[
            pl.BlockSpec((tb, IN_FEATURES), lambda i: (i, 0)),   # x: batch-tiled
            pl.BlockSpec((IN_FEATURES, H1_PAD), const),          # w1
            pl.BlockSpec((1, H1_PAD), const),                    # b1
            pl.BlockSpec((H1_PAD, H2_PAD), const),               # w2
            pl.BlockSpec((1, H2_PAD), const),                    # b2
            pl.BlockSpec((H2_PAD, OUT_PAD), const),              # w3
            pl.BlockSpec((1, OUT_PAD), const),                   # b3
        ],
        out_specs=pl.BlockSpec((tb, OUT_PAD), lambda i: (i, 0)),
        compiler_params=pltpu.CompilerParams(
            dimension_semantics=("parallel",),    # shard batch tiles across TCs
            vmem_limit_bytes=vmem_limit,
        ),
    )(x, w1, b1, w2, b2, w3, b3)

    return out[:B, :NUM_CLASSES]


def init_params(key):
    """Deterministic synthetic parameters matching LinearGroupNJ shapes."""
    ks = jax.random.split(key, 9)

    def linear(kw, kb, kz, in_f, out_f):
        w = jax.random.normal(kw, (out_f, in_f), jnp.float32) * (1.0 / jnp.sqrt(in_f))
        b = jax.random.normal(kb, (out_f,), jnp.float32) * 0.01
        # z_mu (group multiplicative gate) initialized near 1, like N(1, 1e-2).
        z = 1.0 + jax.random.normal(kz, (in_f,), jnp.float32) * 0.01
        return z, w, b

    p1 = linear(ks[0], ks[1], ks[2], IN_FEATURES, H1)
    p2 = linear(ks[3], ks[4], ks[5], H1, H2)
    p3 = linear(ks[6], ks[7], ks[8], H2, NUM_CLASSES)
    return (p1, p2, p3)


def reference_forward(x_nchw, params):
    """Pure-JAX f32 reference matching the original torch eval-mode forward."""
    B = x_nchw.shape[0]
    h = x_nchw.reshape(B, IN_FEATURES)
    (z1, w1, b1), (z2, w2, b2), (z3, w3, b3) = params
    h = jnp.maximum((h * z1) @ w1.T + b1, 0.0)
    h = jnp.maximum((h * z2) @ w2.T + b2, 0.0)
    return (h * z3) @ w3.T + b3


def reference_forward_matched(x_nchw, prepared):
    """Reference using the same bf16-rounded operands / f32 accumulation."""
    w1, b1, w2, b2, w3, b3 = prepared
    B = x_nchw.shape[0]
    cdt = w1.dtype
    h = x_nchw.reshape(B, IN_FEATURES).astype(cdt)
    h = jnp.maximum(jnp.dot(h, w1, preferred_element_type=jnp.float32) + b1, 0.0)
    h = jnp.maximum(jnp.dot(h.astype(cdt), w2, preferred_element_type=jnp.float32) + b2, 0.0)
    y = jnp.dot(h.astype(cdt), w3, preferred_element_type=jnp.float32) + b3
    return y[:, :NUM_CLASSES]


if __name__ == "__main__":
    key = jax.random.PRNGKey(0)
    k_x, k_p = jax.random.split(key)

    B = 2
    x = jax.random.normal(k_x, (B, 3, 32, 32), jnp.float32)
    params = init_params(k_p)

    # One-time cached weight prep (fold z, transpose, pad, cast to bf16).
    prepared = prepare_params(params)

    out = mlp_cifar_forward(x, prepared)
    out = jax.block_until_ready(out)

    assert out.shape == (B, NUM_CLASSES), out.shape

    # Tight check against a reference using identical (bf16) operand rounding.
    ref_m = reference_forward_matched(x, prepared)
    err_m = float(jnp.max(jnp.abs(out - ref_m)))
    assert jnp.allclose(out, ref_m, atol=1e-3, rtol=1e-3), err_m

    # Looser check against the full-f32 torch-semantics reference (bf16 operands).
    ref = reference_forward(x, params)
    err = float(jnp.max(jnp.abs(out - ref)))
    assert jnp.allclose(out, ref, atol=5e-2, rtol=5e-2), err

    print("KERNEL_OK")
</pallas_src>

<mosaic_0001>
module attributes {stable_mosaic.version = 11 : i64} {
  func.func @mlp_cifar_kernel(%arg0: i32, %arg1: memref<8x3072xf32, #tpu.memory_space<vmem>>, %arg2: memref<3072x384xbf16, #tpu.memory_space<vmem>>, %arg3: memref<1x384xf32, #tpu.memory_space<vmem>>, %arg4: memref<384x128xbf16, #tpu.memory_space<vmem>>, %arg5: memref<1x128xf32, #tpu.memory_space<vmem>>, %arg6: memref<128x128xbf16, #tpu.memory_space<vmem>>, %arg7: memref<1x128xf32, #tpu.memory_space<vmem>>, %arg8: memref<8x128xf32, #tpu.memory_space<vmem>>) attributes {dimension_semantics = [#tpu.dimension_semantics<parallel>], iteration_bounds = array<i64: 1>, scalar_prefetch = 0 : i64, scratch_operands = 0 : i64, tpu.core_type = #tpu.core_type<tc>, window_params = [{transform_indices = @transform_0, window_bounds = array<i64: 8, 3072>}, {pipeline_mode = #tpu.pipeline_mode<synchronous>, transform_indices = @transform_1, window_bounds = array<i64: 3072, 384>}, {pipeline_mode = #tpu.pipeline_mode<synchronous>, transform_indices = @transform_2, window_bounds = array<i64: 1, 384>}, {pipeline_mode = #tpu.pipeline_mode<synchronous>, transform_indices = @transform_3, window_bounds = array<i64: 384, 128>}, {pipeline_mode = #tpu.pipeline_mode<synchronous>, transform_indices = @transform_4, window_bounds = array<i64: 1, 128>}, {pipeline_mode = #tpu.pipeline_mode<synchronous>, transform_indices = @transform_5, window_bounds = array<i64: 128, 128>}, {pipeline_mode = #tpu.pipeline_mode<synchronous>, transform_indices = @transform_6, window_bounds = array<i64: 1, 128>}, {transform_indices = @transform_7, window_bounds = array<i64: 8, 128>}]} {
    %c0 = arith.constant 0 : index
    %c0_0 = arith.constant 0 : index
    %0 = vector.load %arg1[%c0, %c0_0] : memref<8x3072xf32, #tpu.memory_space<vmem>>, vector<8x3072xf32>
    %1 = arith.truncf %0 : vector<8x3072xf32> to vector<8x3072xbf16>
    %c0_1 = arith.constant 0 : index
    %c0_2 = arith.constant 0 : index
    %2 = vector.load %arg2[%c0_1, %c0_2] : memref<3072x384xbf16, #tpu.memory_space<vmem>>, vector<3072x384xbf16>
    %cst = arith.constant dense<0.000000e+00> : vector<8x384xf32>
    %3 = tpu.matmul %1, %2, %cst {dimension_numbers = #tpu.dot_dimension_numbers<[1], [0], [0], [1], [0, 0, 1, 1], [], []>} : vector<8x3072xbf16>, vector<3072x384xbf16>, vector<8x384xf32> -> vector<8x384xf32>
    %c0_3 = arith.constant 0 : index
    %c0_4 = arith.constant 0 : index
    %4 = vector.load %arg3[%c0_3, %c0_4] : memref<1x384xf32, #tpu.memory_space<vmem>>, vector<1x384xf32>
    %5 = vector.broadcast %4 : vector<1x384xf32> to vector<8x384xf32>
    %6 = arith.addf %3, %5 : vector<8x384xf32>
    %cst_5 = arith.constant 0.000000e+00 : f32
    %7 = vector.broadcast %cst_5 : f32 to vector<8x384xf32>
    %8 = arith.maximumf %6, %7 : vector<8x384xf32>
    %9 = arith.truncf %8 : vector<8x384xf32> to vector<8x384xbf16>
    %c0_6 = arith.constant 0 : index
    %c0_7 = arith.constant 0 : index
    %10 = vector.load %arg4[%c0_6, %c0_7] : memref<384x128xbf16, #tpu.memory_space<vmem>>, vector<384x128xbf16>
    %cst_8 = arith.constant dense<0.000000e+00> : vector<8x128xf32>
    %11 = tpu.matmul %9, %10, %cst_8 {dimension_numbers = #tpu.dot_dimension_numbers<[1], [0], [0], [1], [0, 0, 1, 1], [], []>} : vector<8x384xbf16>, vector<384x128xbf16>, vector<8x128xf32> -> vector<8x128xf32>
    %c0_9 = arith.constant 0 : index
    %c0_10 = arith.constant 0 : index
    %12 = vector.load %arg5[%c0_9, %c0_10] : memref<1x128xf32, #tpu.memory_space<vmem>>, vector<1x128xf32>
    %13 = vector.broadcast %12 : vector<1x128xf32> to vector<8x128xf32>
    %14 = arith.addf %11, %13 : vector<8x128xf32>
    %cst_11 = arith.constant 0.000000e+00 : f32
    %15 = vector.broadcast %cst_11 : f32 to vector<8x128xf32>
    %16 = arith.maximumf %14, %15 : vector<8x128xf32>
    %17 = arith.truncf %16 : vector<8x128xf32> to vector<8x128xbf16>
    %c0_12 = arith.constant 0 : index
    %c0_13 = arith.constant 0 : index
    %18 = vector.load %arg6[%c0_12, %c0_13] : memref<128x128xbf16, #tpu.memory_space<vmem>>, vector<128x128xbf16>
    %cst_14 = arith.constant dense<0.000000e+00> : vector<8x128xf32>
    %19 = tpu.matmul %17, %18, %cst_14 {dimension_numbers = #tpu.dot_dimension_numbers<[1], [0], [0], [1], [0, 0, 1, 1], [], []>} : vector<8x128xbf16>, vector<128x128xbf16>, vector<8x128xf32> -> vector<8x128xf32>
    %c0_15 = arith.constant 0 : index
    %c0_16 = arith.constant 0 : index
    %20 = vector.load %arg7[%c0_15, %c0_16] : memref<1x128xf32, #tpu.memory_space<vmem>>, vector<1x128xf32>
    %21 = vector.broadcast %20 : vector<1x128xf32> to vector<8x128xf32>
    %22 = arith.addf %19, %21 : vector<8x128xf32>
    %c0_17 = arith.constant 0 : index
    %c0_18 = arith.constant 0 : index
    %23 = vector.load %arg8[%c0_17, %c0_18] : memref<8x128xf32, #tpu.memory_space<vmem>>, vector<8x128xf32>
    tpu.vector_store %arg8[%c0_17, %c0_18], %22 {strides = array<i32>} : memref<8x128xf32, #tpu.memory_space<vmem>>, vector<8x128xf32>,
    return
  }
  func.func @transform_0(%arg0: i32) -> (i32, i32) {
    %c0_i32 = arith.constant 0 : i32
    %c0_i32_0 = arith.constant 0 : i32
    return %arg0, %c0_i32 : i32, i32
  }
  func.func @transform_1(%arg0: i32) -> (i32, i32) {
    %c0_i32 = arith.constant 0 : i32
    %c0_i32_0 = arith.constant 0 : i32
    %c0_i32_1 = arith.constant 0 : i32
    return %c0_i32, %c0_i32_0 : i32, i32
  }
  func.func @transform_2(%arg0: i32) -> (i32, i32) {
    %c0_i32 = arith.constant 0 : i32
    %c0_i32_0 = arith.constant 0 : i32
    %c0_i32_1 = arith.constant 0 : i32
    return %c0_i32, %c0_i32_0 : i32, i32
  }
  func.func @transform_3(%arg0: i32) -> (i32, i32) {
    %c0_i32 = arith.constant 0 : i32
    %c0_i32_0 = arith.constant 0 : i32
    %c0_i32_1 = arith.constant 0 : i32
    return %c0_i32, %c0_i32_0 : i32, i32
  }
  func.func @transform_4(%arg0: i32) -> (i32, i32) {
    %c0_i32 = arith.constant 0 : i32
    %c0_i32_0 = arith.constant 0 : i32
    %c0_i32_1 = arith.constant 0 : i32
    return %c0_i32, %c0_i32_0 : i32, i32
  }
  func.func @transform_5(%arg0: i32) -> (i32, i32) {
    %c0_i32 = arith.constant 0 : i32
    %c0_i32_0 = arith.constant 0 : i32
    %c0_i32_1 = arith.constant 0 : i32
    return %c0_i32, %c0_i32_0 : i32, i32
  }
  func.func @transform_6(%arg0: i32) -> (i32, i32) {
    %c0_i32 = arith.constant 0 : i32
    %c0_i32_0 = arith.constant 0 : i32
    %c0_i32_1 = arith.constant 0 : i32
    return %c0_i32, %c0_i32_0 : i32, i32
  }
  func.func @transform_7(%arg0: i32) -> (i32, i32) {
    %c0_i32 = arith.constant 0 : i32
    %c0_i32_0 = arith.constant 0 : i32
    return %arg0, %c0_i32 : i32, i32
  }
}

</mosaic_0001>

<bundles_post_ra>
// kernel: mlp_cifar_forward.1
= control target key start
LH: loop header
LB: loop body
LE: loop exit
PB: predicated region body
PF: predicated region fallthrough
CT: control target
= control target key end

     0   :  { %12 = vsyncpa [#allocation3], 0  ;;  %s7665_s0 = inlined_call_operand.vmem [shape: f32[8,3072], index: 0, kind: input, shape index: {}]   ;;  %s7666_s1 = inlined_call_operand.hbm [shape: bf16[3072,384], index: 1, kind: input, shape index: {}]   ;;  %s7667_s2 = inlined_call_operand.hbm [shape: f32[1,384], index: 2, kind: input, shape index: {}]   ;;  %s7668_s3 = inlined_call_operand.hbm [shape: bf16[384,128], index: 3, kind: input, shape index: {}]   ;;  %s7669_s4 = inlined_call_operand.hbm [shape: f32[1,128], index: 4, kind: input, shape index: {}]   ;;  %s7670_s5 = inlined_call_operand.hbm [shape: bf16[128,128], index: 5, kind: input, shape index: {}]   ;;  %s7671_s6 = inlined_call_operand.hbm [shape: f32[1,128], index: 6, kind: input, shape index: {}]   ;;  %s7672_s7 = inlined_call_operand.vmem [shape: f32[8,128], index: 7, kind: output, shape index: {}]  }
   0x1   :  { %13 = vsyncpa [#allocation5], 0 }
   0x2   :  { %14 = vsyncpa [#allocation8], 0 }
   0x3   :  { %15 = vsyncpa [#allocation11], 0  ;;  %s7338_s24 = smov [#allocation4]   ;;  %s7339_s26 = smov [#allocation7]  }
   0x4   :  { %s36_s25 = sshll.u32 %s7338_s24, 4  ;;  %s58_s27 = sshll.u32 %s7339_s26, 4  ;;  %s37_s25 = int_to_ptr.vmem [resolvable:$true] %s36_s25  ;;  %s59_s27 = int_to_ptr.vmem [resolvable:$true] %s58_s27 }
   0x5   :  { %s7198_s30 = scalar_lea.hbm %s7667_s2, 48 }
   0x6   :  { %p7199_p0 = scmp.ne.s32.totalorder %s7667_s2, %s7198_s30  ;;  %p7202_p1 = scmp.lt.u32.totalorder %s7198_s30, %s7667_s2 }
   0x8   :  { %p7204_p2 = pnand %p7202_p1, %p7199_p0 }
   0xa   :  { %7207 = shalt.err (!%p7204_p2)
}
   0xb   :  { %s7208_s12 = scalar_lea.vmem %s37_s25, 48  ;;  %s7212_s13 = scalar_lea.vmem %s37_s25, 64 }
   0xc   :  { %p7209_p3 = scmp.ne.s32.totalorder %s37_s25, %s7208_s12  ;;  %p7213_p4 = scmp.lt.s32.totalorder %s37_s25, %s37_s25 }
   0xd   :  { %p7214_p5 = scmp.lt.s32.totalorder %s7212_s13, %s7208_s12 }
   0xf   :  { %p7215_p6 = por %p7214_p5, %p7213_p4 }
  0x11   :  { %p7216_p7 = pnand %p7215_p6, %p7209_p3 }
  0x13   :  { %7219 = shalt.err (!%p7216_p7)
}
  0x14   :  { %39 = dma.hbm_to_vmem [thread:$0]  %s7667_s2, 48, %s37_s25, [#allocation5]  }
  0x15   :  { %s7220_s18 = scalar_lea.hbm %s7669_s4, 16 }
  0x16   :  { %p7221_p8 = scmp.ne.s32.totalorder %s7669_s4, %s7220_s18  ;;  %p7224_p9 = scmp.lt.u32.totalorder %s7220_s18, %s7669_s4 }
  0x18   :  { %p7226_p10 = pnand %p7224_p9, %p7221_p8 }
  0x1a   :  { %7229 = shalt.err (!%p7226_p10)
}
  0x1b   :  { %s7230_s23 = scalar_lea.vmem %s59_s27, 16  ;;  %s7234_s24 = scalar_lea.vmem %s59_s27, 32 }
  0x1c   :  { %p7231_p11 = scmp.ne.s32.totalorder %s59_s27, %s7230_s23  ;;  %p7235_p12 = scmp.lt.s32.totalorder %s59_s27, %s59_s27 }
  0x1d   :  { %p7236_p13 = scmp.lt.s32.totalorder %s7234_s24, %s7230_s23 }
  0x1f   :  { %p7237_p0 = por %p7236_p13, %p7235_p12 }
  0x21   :  { %p7238_p1 = pnand %p7237_p0, %p7231_p11 }
  0x23   :  { %7241 = shalt.err (!%p7238_p1)
}
  0x24   :  { %61 = dma.hbm_to_vmem [thread:$0]  %s7669_s4, 16, %s59_s27, [#allocation8]  }
  0x25   :  { %s7340_s26 = smov [#allocation2]   ;;  %s7242_s8 = scalar_lea.hbm %s7666_s1, 73728 }
  0x26   :  { %s23_s28 = sshll.u32 %s7340_s26, 4  ;;  %p7243_p2 = scmp.ne.s32.totalorder %s7666_s1, %s7242_s8  ;;  %s24_s28 = int_to_ptr.vmem [resolvable:$true] %s23_s28 }
  0x27   :  { %p7246_p3 = scmp.lt.u32.totalorder %s7242_s8, %s7666_s1 }
  0x29   :  { %p7248_p4 = pnand %p7246_p3, %p7243_p2 }
  0x2b   :  { %7251 = shalt.err (!%p7248_p4)
}
  0x2c   :  { %s7252_s13 = scalar_lea.vmem %s24_s28, 73728  ;;  %p7257_p6 = scmp.lt.s32.totalorder %s24_s28, %s24_s28 }
  0x2d   :  { %p7253_p5 = scmp.ne.s32.totalorder %s24_s28, %s7252_s13  ;;  %p7258_p7 = scmp.lt.s32.totalorder %s7252_s13, %s7252_s13 }
  0x2f   :  { %p7259_p8 = por %p7258_p7, %p7257_p6 }
  0x31   :  { %p7260_p9 = pnand %p7259_p8, %p7253_p5 }
  0x33   :  { %7263 = shalt.err (!%p7260_p9)
}
  0x34   :  { %s7341_s4 = smov 192   ;;  %s7342_s27 = smov 12  }
  0x35   :  { %29 = dma.hbm_to_vmem [thread:$0]  %s7666_s1, 73728, %s24_s28, [#allocation3], %s7341_s4, %s7341_s4, %s7342_s27  }
  0x36   :  { %s7343_s16 = smov [#allocation6]   ;;  %s7264_s20 = scalar_lea.hbm %s7668_s3, 3072 }
  0x37   :  { %s45_s17 = sshll.u32 %s7343_s16, 4  ;;  %p7265_p10 = scmp.ne.s32.totalorder %s7668_s3, %s7264_s20  ;;  %s46_s17 = int_to_ptr.vmem [resolvable:$true] %s45_s17 }
  0x38   :  { %p7268_p11 = scmp.lt.u32.totalorder %s7264_s20, %s7668_s3 }
  0x3a   :  { %p7270_p12 = pnand %p7268_p11, %p7265_p10 }
  0x3c   :  { %7273 = shalt.err (!%p7270_p12)
}
  0x3d   :  { %s7274_s2 = scalar_lea.vmem %s46_s17, 3072  ;;  %p7279_p0 = scmp.lt.s32.totalorder %s46_s17, %s46_s17 }
  0x3e   :  { %p7275_p13 = scmp.ne.s32.totalorder %s46_s17, %s7274_s2  ;;  %p7280_p1 = scmp.lt.s32.totalorder %s7274_s2, %s7274_s2 }
  0x40   :  { %p7281_p2 = por %p7280_p1, %p7279_p0 }
  0x42   :  { %p7282_p3 = pnand %p7281_p2, %p7275_p13 }
  0x44   :  { %7285 = shalt.err (!%p7282_p3)
}
  0x45   :  { %s7344_s1 = smov 64   ;;  %s7345_s25 = smov 4  }
  0x46   :  { %51 = dma.hbm_to_vmem [thread:$0]  %s7668_s3, 3072, %s46_s17, [#allocation5], %s7344_s1, %s7344_s1, %s7345_s25  }
  0x47   :  { %s7346_s29 = smov [#allocation9]   ;;  %s7347_s8 = smov [#allocation10]  }
  0x48   :  { %s67_s30 = sshll.u32 %s7346_s29, 4  ;;  %s80_s9 = sshll.u32 %s7347_s8, 4  ;;  %s68_s30 = int_to_ptr.vmem [resolvable:$true] %s67_s30  ;;  %s81_s9 = int_to_ptr.vmem [resolvable:$true] %s80_s9 }
  0x49   :  { %s7286_s12 = scalar_lea.hbm %s7670_s5, 1024 }
  0x4a   :  { %p7287_p4 = scmp.ne.s32.totalorder %s7670_s5, %s7286_s12  ;;  %p7290_p5 = scmp.lt.u32.totalorder %s7286_s12, %s7670_s5 }
  0x4c   :  { %p7292_p6 = pnand %p7290_p5, %p7287_p4 }
  0x4e   :  { %7295 = shalt.err (!%p7292_p6)
}
  0x4f   :  { %s7296_s3 = scalar_lea.vmem %s68_s30, 1024  ;;  %p7301_p8 = scmp.lt.s32.totalorder %s68_s30, %s68_s30 }
  0x50   :  { %p7297_p7 = scmp.ne.s32.totalorder %s68_s30, %s7296_s3  ;;  %p7302_p9 = scmp.lt.s32.totalorder %s7296_s3, %s7296_s3 }
  0x52   :  { %p7303_p10 = por %p7302_p9, %p7301_p8 }
  0x54   :  { %p7304_p11 = pnand %p7303_p10, %p7297_p7 }
  0x56   :  { %7307 = shalt.err (!%p7304_p11)
}
  0x57   :  { %73 = dma.hbm_to_vmem [thread:$0]  %s7670_s5, 1024, %s68_s30, [#allocation8], %s7344_s1, %s7344_s1, %s7345_s25  }
  0x58   :  { %s7308_s19 = scalar_lea.hbm %s7671_s6, 16 }
  0x59   :  { %p7309_p12 = scmp.ne.s32.totalorder %s7671_s6, %s7308_s19  ;;  %p7312_p13 = scmp.lt.u32.totalorder %s7308_s19, %s7671_s6 }
  0x5b   :  { %p7314_p0 = pnand %p7312_p13, %p7309_p12 }
  0x5d   :  { %7317 = shalt.err (!%p7314_p0)
}
  0x5e   :  { %s7318_s24 = scalar_lea.vmem %s81_s9, 16  ;;  %s7322_s2 = scalar_lea.vmem %s81_s9, 32 }
  0x5f   :  { %p7319_p1 = scmp.ne.s32.totalorder %s81_s9, %s7318_s24  ;;  %p7323_p2 = scmp.lt.s32.totalorder %s81_s9, %s81_s9 }
  0x60   :  { %p7324_p3 = scmp.lt.s32.totalorder %s7322_s2, %s7318_s24 }
  0x62   :  { %p7325_p4 = por %p7324_p3, %p7323_p2 }
  0x64   :  { %p7326_p5 = pnand %p7325_p4, %p7319_p1 }
  0x66   :  { %7329 = shalt.err (!%p7326_p5)
}
  0x67   :  { %83 = dma.hbm_to_vmem [thread:$0]  %s7671_s6, 16, %s81_s9, [#allocation11]  }
  0x68   :  { %7330 = dma.done.wait [#allocation3], 73728  }
  0x69   :  { %7331 = vsyncadd [#allocation3], 4294893568 }
  0x6a   :  { %7332 = dma.done.wait [#allocation5], 3120  }
  0x6b   :  { %7333 = vsyncadd [#allocation5], 4294964176 }
  0x6c   :  { %7334 = dma.done.wait [#allocation8], 1040  }
  0x6d   :  { %7335 = vsyncadd [#allocation8], 4294966256 }
  0x6e   :  { %7336 = dma.done.wait [#allocation11], 16  }
  0x6f   :  { %7337 = vsyncadd [#allocation11], 4294967280  ;;  %v6397_v0 = vld [vmem:[#allocation2 + $0x4] ss:$12 sps:$4 sm:$0xff]   ;;  %v6401_v2 = vld [vmem:[#allocation2] ss:$12 sps:$4 sm:$0xff]  }
  0x70   :  { %v6399_v1 = vld [vmem:[#allocation2 + $0x304] ss:$12 sps:$4 sm:$0xff]   ;;  %4008 = vmatprep.subr.bf16.mxu1 %v6397_v0  ;;  %v6402_v3 = vld [vmem:[#allocation2 + $0x300] ss:$12 sps:$4 sm:$0xff]   ;;  %v6403_v4 = vld [vmem:[#allocation2 + $0x1c] ss:$12 sps:$4 sm:$0xff]  }
  0x71   :  { %4090 = vmatprep.subr.bf16.mxu0 %v6399_v1  ;;  %4009 = vmatpush1.bf16.msra.mxu1 %v6401_v2  ;;  %v6405_v5 = vld [vmem:[#allocation2 + $0x31c] ss:$12 sps:$4 sm:$0xff]   ;;  %v6407_v6 = vld [vmem:[#allocation2 + $0x18] ss:$12 sps:$4 sm:$0xff]   ;;  %v6409_v8 = vld [vmem:[#allocation2 + $0x34] ss:$12 sps:$4 sm:$0xff]  }
  0x72   :  { %4091 = vmatpush1.bf16.msra.mxu0 %v6402_v3  ;;  %4010 = vmatprep.subr.bf16.mxu1 %v6403_v4  ;;  %v6408_v7 = vld [vmem:[#allocation2 + $0x318] ss:$12 sps:$4 sm:$0xff]   ;;  %v6411_v9 = vld [vmem:[#allocation2 + $0x334] ss:$12 sps:$4 sm:$0xff]   ;;  %v6413_v10 = vld [vmem:[#allocation2 + $0x30] ss:$12 sps:$4 sm:$0xff]  }
  0x73   :  { %4092 = vmatprep.subr.bf16.mxu0 %v6405_v5  ;;  %v6414_v11 = vld [vmem:[#allocation2 + $0x330] ss:$12 sps:$4 sm:$0xff]   ;;  %v6415_v12 = vld [vmem:[#allocation2 + $0x4c] ss:$12 sps:$4 sm:$0xff]   ;;  %v6419_v14 = vld [vmem:[#allocation2 + $0x48] ss:$12 sps:$4 sm:$0xff]  }
  0x74   :  { %v6417_v13 = vld [vmem:[#allocation2 + $0x34c] ss:$12 sps:$4 sm:$0xff]   ;;  %v6420_v15 = vld [vmem:[#allocation2 + $0x348] ss:$12 sps:$4 sm:$0xff]   ;;  %v6421_v16 = vld [vmem:[#allocation2 + $0x64] ss:$12 sps:$4 sm:$0xff]  }
  0x75   :  { %4011 = vmatpush1.bf16.msra.mxu1 %v6407_v6  ;;  %v6423_v17 = vld [vmem:[#allocation2 + $0x364] ss:$12 sps:$4 sm:$0xff]   ;;  %v6425_v18 = vld [vmem:[#allocation2 + $0x60] ss:$12 sps:$4 sm:$0xff]   ;;  %v6427_v20 = vld [vmem:[#allocation2 + $0x7c] ss:$12 sps:$4 sm:$0xff]  }
  0x76   :  { %4093 = vmatpush1.bf16.msra.mxu0 %v6408_v7  ;;  %4012 = vmatprep.subr.bf16.mxu1 %v6409_v8  ;;  %v6426_v19 = vld [vmem:[#allocation2 + $0x360] ss:$12 sps:$4 sm:$0xff]   ;;  %v6429_v21 = vld [vmem:[#allocation2 + $0x37c] ss:$12 sps:$4 sm:$0xff]   ;;  %v6431_v22 = vld [vmem:[#allocation2 + $0x78] ss:$12 sps:$4 sm:$0xff]  }
  0x77   :  { %4094 = vmatprep.subr.bf16.mxu0 %v6411_v9  ;;  %v6432_v23 = vld [vmem:[#allocation2 + $0x378] ss:$12 sps:$4 sm:$0xff]   ;;  %v6433_v24 = vld [vmem:[#allocation2 + $0x94] ss:$12 sps:$4 sm:$0xff]   ;;  %v6437_v26 = vld [vmem:[#allocation2 + $0x90] ss:$12 sps:$4 sm:$0xff]  }
  0x78   :  { %v6435_v25 = vld [vmem:[#allocation2 + $0x394] ss:$12 sps:$4 sm:$0xff]   ;;  %v6438_v27 = vld [vmem:[#allocation2 + $0x390] ss:$12 sps:$4 sm:$0xff]   ;;  %v6439_v28 = vld [vmem:[#allocation2 + $0xac] ss:$12 sps:$4 sm:$0xff]  }
  0x79   :  { %4013 = vmatpush1.bf16.msra.mxu1 %v6413_v10  ;;  %v6441_v29 = vld [vmem:[#allocation2 + $0x3ac] ss:$12 sps:$4 sm:$0xff]   ;;  %v6443_v30 = vld [vmem:[#allocation2 + $0xa8] ss:$12 sps:$4 sm:$0xff]   ;;  %v6445_v32 = vld [vmem:[#allocation2 + $0xc4] ss:$12 sps:$4 sm:$0xff]  }
  0x7a   :  { %4095 = vmatpush1.bf16.msra.mxu0 %v6414_v11  ;;  %4014 = vmatprep.subr.bf16.mxu1 %v6415_v12  ;;  %v6444_v31 = vld [vmem:[#allocation2 + $0x3a8] ss:$12 sps:$4 sm:$0xff]   ;;  %v6447_v33 = vld [vmem:[#allocation2 + $0x3c4] ss:$12 sps:$4 sm:$0xff]   ;;  %v6449_v34 = vld [vmem:[#allocation2 + $0xc0] ss:$12 sps:$4 sm:$0xff]  }
  0x7b   :  { %4096 = vmatprep.subr.bf16.mxu0 %v6417_v13  ;;  %v6450_v35 = vld [vmem:[#allocation2 + $0x3c0] ss:$12 sps:$4 sm:$0xff]   ;;  %v6451_v36 = vld [vmem:[#allocation2 + $0xdc] ss:$12 sps:$4 sm:$0xff]   ;;  %v6455_v38 = vld [vmem:[#allocation2 + $0xd8] ss:$12 sps:$4 sm:$0xff]  }
  0x7c   :  { %v6453_v37 = vld [vmem:[#allocation2 + $0x3dc] ss:$12 sps:$4 sm:$0xff]   ;;  %v6456_v39 = vld [vmem:[#allocation2 + $0x3d8] ss:$12 sps:$4 sm:$0xff]   ;;  %v6457_v40 = vld [vmem:[#allocation2 + $0xf4] ss:$12 sps:$4 sm:$0xff]  }
  0x7d   :  { %4015 = vmatpush1.bf16.msra.mxu1 %v6419_v14  ;;  %v6459_v41 = vld [vmem:[#allocation2 + $0x3f4] ss:$12 sps:$4 sm:$0xff]   ;;  %v6461_v42 = vld [vmem:[#allocation2 + $0xf0] ss:$12 sps:$4 sm:$0xff]   ;;  %v6463_v44 = vld [vmem:[#allocation2 + $0x10c] ss:$12 sps:$4 sm:$0xff]  }
  0x7e   :  { %4097 = vmatpush1.bf16.msra.mxu0 %v6420_v15  ;;  %4016 = vmatprep.subr.bf16.mxu1 %v6421_v16  ;;  %v6462_v43 = vld [vmem:[#allocation2 + $0x3f0] ss:$12 sps:$4 sm:$0xff]   ;;  %v6465_v45 = vld [vmem:[#allocation2 + $0x40c] ss:$12 sps:$4 sm:$0xff]   ;;  %v6467_v47 = vld [vmem:[#allocation2 + $0x108] ss:$12 sps:$4 sm:$0xff]  }
  0x7f   :  { %4098 = vmatprep.subr.bf16.mxu0 %v6423_v17  ;;  %v104_v46 = vld [vmem:[%s7665_s0 + $0x8] sm:$0xff]  ;;  %v6469_v51 = vld [vmem:[#allocation2 + $0x124] ss:$12 sps:$4 sm:$0xff]   ;;  %v6481_v60 = vld [vmem:[#allocation2 + $0x154] ss:$12 sps:$4 sm:$0xff]   ;;  %vm7349_vm0 = vmmov 0  }
  0x80   :  { %v7465_v48 = vpack.c.bf16 %v104_v46, %v104_v46  ;;  %v6468_v49 = vld [vmem:[#allocation2 + $0x408] ss:$12 sps:$4 sm:$0xff]   ;;  %v6471_v52 = vld [vmem:[#allocation2 + $0x424] ss:$12 sps:$4 sm:$0xff]   ;;  %v6473_v54 = vld [vmem:[#allocation2 + $0x120] ss:$12 sps:$4 sm:$0xff]  }
  0x81   :  { %4017 = vmatpush1.bf16.msra.mxu1 %v6425_v18  ;;  %v108_v50 = vld [vmem:[%s7665_s0 + $0x28] sm:$0xff]  ;;  %v6479_v58 = vld [vmem:[#allocation2 + $0x138] ss:$12 sps:$4 sm:$0xff]   ;;  %v6483_v61 = vld [vmem:[#allocation2 + $0x454] ss:$12 sps:$4 sm:$0xff]  }
  0x82   :  { %4099 = vmatpush1.bf16.msra.mxu0 %v6426_v19  ;;  %4018 = vmatprep.subr.bf16.mxu1 %v6427_v20  ;;  %v7470_v53 = vpack.c.bf16 %v108_v50, %v108_v50  ;;  %v6474_v55 = vld [vmem:[#allocation2 + $0x420] ss:$12 sps:$4 sm:$0xff]   ;;  %v6475_v56 = vld [vmem:[#allocation2 + $0x13c] ss:$12 sps:$4 sm:$0xff]   ;;  %v6480_v59 = vld [vmem:[#allocation2 + $0x438] ss:$12 sps:$4 sm:$0xff]  }
  0x83   :  { %4100 = vmatprep.subr.bf16.mxu0 %v6429_v21  ;;  %4040 = vmatprep.mubr.bf16.mxu1 %v7465_v48  ;;  %v6477_v57 = vld [vmem:[#allocation2 + $0x43c] ss:$12 sps:$4 sm:$0xff]   ;;  %v6487_v0 = vld [vmem:[#allocation2 + $0x16c] ss:$12 sps:$4 sm:$0xff]   ;;  %v6495_v4 = vld [vmem:[#allocation2 + $0x184] ss:$12 sps:$4 sm:$0xff]  }
  0x84   :  { %4122 = vmatprep.mubr.bf16.mxu0 %v7470_v53  ;;  %v6485_v62 = vld [vmem:[#allocation2 + $0x150] ss:$12 sps:$4 sm:$0xff]   ;;  %v6489_v1 = vld [vmem:[#allocation2 + $0x46c] ss:$12 sps:$4 sm:$0xff]   ;;  %v6491_v2 = vld [vmem:[#allocation2 + $0x168] ss:$12 sps:$4 sm:$0xff]  }
  0x85   :  { %4019 = vmatpush1.bf16.msra.mxu1 %v6431_v22  ;;  %v6486_v63 = vld [vmem:[#allocation2 + $0x450] ss:$12 sps:$4 sm:$0xff]   ;;  %v6492_v3 = vld [vmem:[#allocation2 + $0x468] ss:$12 sps:$4 sm:$0xff]   ;;  %v103_v5 = vld [vmem:[%s7665_s0] sm:$0xff] }
  0x86   :  { %4101 = vmatpush1.bf16.msra.mxu0 %v6432_v23  ;;  %4020 = vmatprep.subr.bf16.mxu1 %v6433_v24  ;;  %v107_v6 = vld [vmem:[%s7665_s0 + $0x20] sm:$0xff]  ;;  %v7480_v10 = vpack.c.bf16 %v103_v5, %v103_v5  ;;  %v6501_v12 = vld [vmem:[#allocation2 + $0x19c] ss:$12 sps:$4 sm:$0xff]   ;;  %v6513_v20 = vld [vmem:[#allocation2 + $0x1cc] ss:$12 sps:$4 sm:$0xff]  }
  0x87   :  { %4102 = vmatprep.subr.bf16.mxu0 %v6435_v25  ;;  %v6498_v7 = vld [vmem:[#allocation2 + $0x484] ss:$12 sps:$4 sm:$0xff]   ;;  %v6493_v8 = vld [vmem:[#allocation2 + $0x180] ss:$12 sps:$4 sm:$0xff]   ;;  %v7482_v11 = vpack.c.bf16 %v107_v6, %v107_v6  ;;  %v6504_v13 = vld [vmem:[#allocation2 + $0x49c] ss:$12 sps:$4 sm:$0xff]  }
  0x88   :  { %v6496_v9 = vld [vmem:[#allocation2 + $0x480] ss:$12 sps:$4 sm:$0xff]   ;;  %v6499_v14 = vld [vmem:[#allocation2 + $0x198] ss:$12 sps:$4 sm:$0xff]   ;;  %v6505_v18 = vld [vmem:[#allocation2 + $0x1b0] ss:$12 sps:$4 sm:$0xff]  }
  0x89   :  { %4021 = vmatpush1.bf16.msra.mxu1 %v6437_v26  ;;  %v6502_v15 = vld [vmem:[#allocation2 + $0x498] ss:$12 sps:$4 sm:$0xff]   ;;  %v6507_v16 = vld [vmem:[#allocation2 + $0x1b4] ss:$12 sps:$4 sm:$0xff]   ;;  %v6508_v19 = vld [vmem:[#allocation2 + $0x4b0] ss:$12 sps:$4 sm:$0xff]  }
  0x8a   :  { %4103 = vmatpush1.bf16.msra.mxu0 %v6438_v27  ;;  %4022 = vmatprep.subr.bf16.mxu1 %v6439_v28  ;;  %v6510_v17 = vld [vmem:[#allocation2 + $0x4b4] ss:$12 sps:$4 sm:$0xff]   ;;  %v6516_v21 = vld [vmem:[#allocation2 + $0x4cc] ss:$12 sps:$4 sm:$0xff]   ;;  %v6519_v24 = vld [vmem:[#allocation2 + $0x1e4] ss:$12 sps:$4 sm:$0xff]  }
  0x8b   :  { %4104 = vmatprep.subr.bf16.mxu0 %v6441_v29  ;;  %v6511_v22 = vld [vmem:[#allocation2 + $0x1c8] ss:$12 sps:$4 sm:$0xff]   ;;  %v6522_v25 = vld [vmem:[#allocation2 + $0x4e4] ss:$12 sps:$4 sm:$0xff]   ;;  %v6517_v26 = vld [vmem:[#allocation2 + $0x1e0] ss:$12 sps:$4 sm:$0xff]  }
  0x8c   :  { %v6514_v23 = vld [vmem:[#allocation2 + $0x4c8] ss:$12 sps:$4 sm:$0xff]   ;;  %v6520_v27 = vld [vmem:[#allocation2 + $0x4e0] ss:$12 sps:$4 sm:$0xff]   ;;  %v6574_v5 = vld [vmem:[#allocation2 + $0x5b8] ss:$12 sps:$4 sm:$0xff]  }
  0x8d   :  { %4023 = vmatpush1.bf16.msra.mxu1 %v6443_v30  ;;  %v6525_v28 = vld [vmem:[#allocation2 + $0x1fc] ss:$12 sps:$4 sm:$0xff]   ;;  %v6523_v30 = vld [vmem:[#allocation2 + $0x1f8] ss:$12 sps:$4 sm:$0xff]   ;;  %v6541_v46 = vld [vmem:[#allocation2 + $0x240] ss:$12 sps:$4 sm:$0xff]  }
  0x8e   :  { %4105 = vmatpush1.bf16.msra.mxu0 %v6444_v31  ;;  %4024 = vmatprep.subr.bf16.mxu1 %v6445_v32  ;;  %v6528_v29 = vld [vmem:[#allocation2 + $0x4fc] ss:$12 sps:$4 sm:$0xff]   ;;  %v6526_v31 = vld [vmem:[#allocation2 + $0x4f8] ss:$12 sps:$4 sm:$0xff]   ;;  %v6531_v32 = vld [vmem:[#allocation2 + $0x214] ss:$12 sps:$4 sm:$0xff]  }
  0x8f   :  { %4106 = vmatprep.subr.bf16.mxu0 %v6447_v33  ;;  %v6534_v33 = vld [vmem:[#allocation2 + $0x514] ss:$12 sps:$4 sm:$0xff]   ;;  %v6552_v50 = vld [vmem:[#allocation2 + $0x55c] ss:$12 sps:$4 sm:$0xff]  }
  0x90   :  { %v6579_v6 = vld [vmem:[#allocation2 + $0x2d4] ss:$12 sps:$4 sm:$0xff]  }
  0x91   :  { %4025 = vmatpush1.bf16.msra.mxu1 %v6449_v34  ;;  %v106_v34 = vld [vmem:[%s7665_s0 + $0x18] sm:$0xff] }
  0x92   :  { %4107 = vmatpush1.bf16.msra.mxu0 %v6450_v35  ;;  %4026 = vmatprep.subr.bf16.mxu1 %v6451_v36  ;;  %v7489_v35 = vpack.c.bf16 %v106_v34, %v106_v34  ;;  %v110_v36 = vld [vmem:[%s7665_s0 + $0x38] sm:$0xff]  ;;  %v6604_v34 = vld [vmem:[#allocation2 + $0x648] ss:$12 sps:$4 sm:$0xff]  }
  0x93   :  { %4108 = vmatprep.subr.bf16.mxu0 %v6453_v37  ;;  %v6529_v37 = vld [vmem:[#allocation2 + $0x210] ss:$12 sps:$4 sm:$0xff]  }
  0x95   :  { %4027 = vmatpush1.bf16.msra.mxu1 %v6455_v38  ;;  %v6532_v38 = vld [vmem:[#allocation2 + $0x510] ss:$12 sps:$4 sm:$0xff]  }
  0x96   :  { %4109 = vmatpush1.bf16.msra.mxu0 %v6456_v39  ;;  %4028 = vmatprep.subr.bf16.mxu1 %v6457_v40  ;;  %v7494_v39 = vpack.c.bf16 %v110_v36, %v110_v36  ;;  %v6537_v40 = vld [vmem:[#allocation2 + $0x22c] ss:$12 sps:$4 sm:$0xff]   ;;  %v6608_v36 = vld [vmem:[#allocation2 + $0x50] ss:$12 sps:$4 sm:$0xff]  }
  0x97   :  { %4110 = vmatprep.subr.bf16.mxu0 %v6459_v41  ;;  %v6540_v41 = vld [vmem:[#allocation2 + $0x52c] ss:$12 sps:$4 sm:$0xff]  }
  0x99   :  { %4029 = vmatpush1.bf16.msra.mxu1 %v6461_v42  ;;  %v6535_v42 = vld [vmem:[#allocation2 + $0x228] ss:$12 sps:$4 sm:$0xff]  }
  0x9a   :  { %4111 = vmatpush1.bf16.msra.mxu0 %v6462_v43  ;;  %4030 = vmatprep.subr.bf16.mxu1 %v6463_v44  ;;  %v6538_v43 = vld [vmem:[#allocation2 + $0x528] ss:$12 sps:$4 sm:$0xff]   ;;  %v6543_v44 = vld [vmem:[#allocation2 + $0x244] ss:$12 sps:$4 sm:$0xff]  }
  0x9b   :  { %4112 = vmatprep.subr.bf16.mxu0 %v6465_v45  ;;  %v6546_v45 = vld [vmem:[#allocation2 + $0x544] ss:$12 sps:$4 sm:$0xff]  }
  0x9d   :  { %4031 = vmatpush1.bf16.msra.mxu1 %v6467_v47  ;;  %v6544_v47 = vld [vmem:[#allocation2 + $0x540] ss:$12 sps:$4 sm:$0xff]  }
  0x9e   :  { %4113 = vmatpush1.bf16.msra.mxu0 %v6468_v49  ;;  %4032 = vmatprep.subr.bf16.mxu1 %v6469_v51  ;;  %v6549_v49 = vld [vmem:[#allocation2 + $0x25c] ss:$12 sps:$4 sm:$0xff]   ;;  %v6547_v51 = vld [vmem:[#allocation2 + $0x258] ss:$12 sps:$4 sm:$0xff]  }
  0x9f   :  { %4114 = vmatprep.subr.bf16.mxu0 %v6471_v52  ;;  %v6550_v52 = vld [vmem:[#allocation2 + $0x558] ss:$12 sps:$4 sm:$0xff]  }
  0xa1   :  { %4033 = vmatpush1.bf16.msra.mxu1 %v6473_v54  ;;  %v6555_v54 = vld [vmem:[#allocation2 + $0x274] ss:$12 sps:$4 sm:$0xff]  }
  0xa2   :  { %4115 = vmatpush1.bf16.msra.mxu0 %v6474_v55  ;;  %4034 = vmatprep.subr.bf16.mxu1 %v6475_v56  ;;  %v6558_v55 = vld [vmem:[#allocation2 + $0x574] ss:$12 sps:$4 sm:$0xff]   ;;  %v6553_v56 = vld [vmem:[#allocation2 + $0x270] ss:$12 sps:$4 sm:$0xff]  }
  0xa3   :  { %4116 = vmatprep.subr.bf16.mxu0 %v6477_v57  ;;  %v6556_v57 = vld [vmem:[#allocation2 + $0x570] ss:$12 sps:$4 sm:$0xff]  }
  0xa5   :  { %4035 = vmatpush1.bf16.msra.mxu1 %v6479_v58  ;;  %v6561_v58 = vld [vmem:[#allocation2 + $0x28c] ss:$12 sps:$4 sm:$0xff]  }
  0xa6   :  { %4117 = vmatpush1.bf16.msra.mxu0 %v6480_v59  ;;  %4036 = vmatprep.subr.bf16.mxu1 %v6481_v60  ;;  %v6564_v59 = vld [vmem:[#allocation2 + $0x58c] ss:$12 sps:$4 sm:$0xff]   ;;  %v6559_v60 = vld [vmem:[#allocation2 + $0x288] ss:$12 sps:$4 sm:$0xff]  }
  0xa7   :  { %4118 = vmatprep.subr.bf16.mxu0 %v6483_v61  ;;  %v6562_v61 = vld [vmem:[#allocation2 + $0x588] ss:$12 sps:$4 sm:$0xff]  }
  0xa9   :  { %4037 = vmatpush1.bf16.msra.mxu1 %v6485_v62  ;;  %v6567_v62 = vld [vmem:[#allocation2 + $0x2a4] ss:$12 sps:$4 sm:$0xff]  }
  0xaa   :  { %4119 = vmatpush1.bf16.msra.mxu0 %v6486_v63  ;;  %4038 = vmatprep.subr.bf16.mxu1 %v6487_v0  ;;  %v6570_v63 = vld [vmem:[#allocation2 + $0x5a4] ss:$12 sps:$4 sm:$0xff]   ;;  %v6565_v0 = vld [vmem:[#allocation2 + $0x2a0] ss:$12 sps:$4 sm:$0xff]  }
  0xab   :  { %4120 = vmatprep.subr.bf16.mxu0 %v6489_v1  ;;  %v6568_v1 = vld [vmem:[#allocation2 + $0x5a0] ss:$12 sps:$4 sm:$0xff]  }
  0xad   :  { %4039 = vmatpush1.bf16.msra.mxu1 %v6491_v2  ;;  %v6573_v2 = vld [vmem:[#allocation2 + $0x2bc] ss:$12 sps:$4 sm:$0xff]  }
  0xae   :  { %4121 = vmatpush1.bf16.msra.mxu0 %v6492_v3  ;;  %4049 = vmatprep.subr.bf16.mxu1 %v6495_v4  ;;  %v6576_v3 = vld [vmem:[#allocation2 + $0x5bc] ss:$12 sps:$4 sm:$0xff]   ;;  %v6571_v4 = vld [vmem:[#allocation2 + $0x2b8] ss:$12 sps:$4 sm:$0xff]  }
  0xaf   :  { %4131 = vmatprep.subr.bf16.mxu0 %v6498_v7  ;;  %v6582_v7 = vld [vmem:[#allocation2 + $0x5d4] ss:$12 sps:$4 sm:$0xff]  }
  0xb0   :  { %4041 = vmatmul.mubr.bf16.vlgmr.msra.gmra.mrb[0].mxu1 %v7480_v10 }
  0xb1   :  { %4123 = vmatmul.mubr.bf16.vlgmr.msra.gmra.mrb[0].mxu0 %v7482_v11  ;;  %4050 = vmatpush1.bf16.msra.mxu1 %v6493_v8  ;;  %v6577_v8 = vld [vmem:[#allocation2 + $0x2d0] ss:$12 sps:$4 sm:$0xff]  }
  0xb2   :  { %4132 = vmatpush1.bf16.msra.mxu0 %v6496_v9  ;;  %4051 = vmatprep.subr.bf16.mxu1 %v6501_v12  ;;  %v6580_v9 = vld [vmem:[#allocation2 + $0x5d0] ss:$12 sps:$4 sm:$0xff]   ;;  %v6585_v12 = vld [vmem:[#allocation2 + $0x2ec] ss:$12 sps:$4 sm:$0xff]  }
  0xb3   :  { %4133 = vmatprep.subr.bf16.mxu0 %v6504_v13  ;;  %4081 = vmatprep.mubr.bf16.mxu1 %v7489_v35  ;;  %v6588_v13 = vld [vmem:[#allocation2 + $0x5ec] ss:$12 sps:$4 sm:$0xff]  }
  0xb4   :  { %4163 = vmatprep.mubr.bf16.mxu0 %v7494_v39 }
  0xb5   :  { %4052 = vmatpush1.bf16.msra.mxu1 %v6499_v14  ;;  %v6583_v14 = vld [vmem:[#allocation2 + $0x2e8] ss:$12 sps:$4 sm:$0xff]  }
  0xb6   :  { %4134 = vmatpush1.bf16.msra.mxu0 %v6502_v15  ;;  %4053 = vmatprep.subr.bf16.mxu1 %v6507_v16  ;;  %v6586_v15 = vld [vmem:[#allocation2 + $0x5e8] ss:$12 sps:$4 sm:$0xff]  }
  0xb7   :  { %4135 = vmatprep.subr.bf16.mxu0 %v6510_v17  ;;  %v105_v16 = vld [vmem:[%s7665_s0 + $0x10] sm:$0xff] }
  0xb8   :  { %v109_v17 = vld [vmem:[%s7665_s0 + $0x30] sm:$0xff] }
  0xb9   :  { %4054 = vmatpush1.bf16.msra.mxu1 %v6505_v18  ;;  %v6591_v18 = vld [vmem:[#allocation2 + $0x604] ss:$12 sps:$4 sm:$0xff]  }
  0xba   :  { %4136 = vmatpush1.bf16.msra.mxu0 %v6508_v19  ;;  %4055 = vmatprep.subr.bf16.mxu1 %v6513_v20  ;;  %v6592_v19 = vld [vmem:[#allocation2 + $0xc8] ss:$12 sps:$4 sm:$0xff]   ;;  %v6589_v20 = vld [vmem:[#allocation2 + $0x600] ss:$12 sps:$4 sm:$0xff]  }
  0xbb   :  { %4137 = vmatprep.subr.bf16.mxu0 %v6516_v21  ;;  %v7504_v21 = vpack.c.bf16 %v105_v16, %v105_v16  ;;  %v6658_v16 = vld [vmem:[#allocation2 + $0x200] ss:$12 sps:$4 sm:$0xff]  }
  0xbd   :  { %4056 = vmatpush1.bf16.msra.mxu1 %v6511_v22  ;;  %v7506_v22 = vpack.c.bf16 %v109_v17, %v109_v17  ;;  %v6661_v17 = vld [vmem:[#allocation2 + $0x754] ss:$12 sps:$4 sm:$0xff]  }
  0xbe   :  { %4138 = vmatpush1.bf16.msra.mxu0 %v6514_v23  ;;  %4057 = vmatprep.subr.bf16.mxu1 %v6519_v24  ;;  %v6593_v23 = vld [vmem:[#allocation2 + $0x8] ss:$12 sps:$4 sm:$0xff]  }
  0xbf   :  { %4139 = vmatprep.subr.bf16.mxu0 %v6522_v25  ;;  %v6596_v24 = vld [vmem:[#allocation2 + $0x61c] ss:$12 sps:$4 sm:$0xff]   ;;  %v6597_v25 = vld [vmem:[#allocation2 + $0xe0] ss:$12 sps:$4 sm:$0xff]  }
  0xc1   :  { %4058 = vmatpush1.bf16.msra.mxu1 %v6517_v26  ;;  %v6594_v26 = vld [vmem:[#allocation2 + $0x618] ss:$12 sps:$4 sm:$0xff]  }
  0xc2   :  { %4140 = vmatpush1.bf16.msra.mxu0 %v6520_v27  ;;  %4059 = vmatprep.subr.bf16.mxu1 %v6525_v28  ;;  %v6598_v27 = vld [vmem:[#allocation2 + $0x20] ss:$12 sps:$4 sm:$0xff]  }
  0xc3   :  { %4141 = vmatprep.subr.bf16.mxu0 %v6528_v29  ;;  %v6601_v28 = vld [vmem:[#allocation2 + $0x634] ss:$12 sps:$4 sm:$0xff]   ;;  %v6602_v29 = vld [vmem:[#allocation2 + $0xf8] ss:$12 sps:$4 sm:$0xff]  }
  0xc5   :  { %4060 = vmatpush1.bf16.msra.mxu1 %v6523_v30  ;;  %v6599_v30 = vld [vmem:[#allocation2 + $0x630] ss:$12 sps:$4 sm:$0xff]  }
  0xc6   :  { %4142 = vmatpush1.bf16.msra.mxu0 %v6526_v31  ;;  %4061 = vmatprep.subr.bf16.mxu1 %v6531_v32  ;;  %v6603_v31 = vld [vmem:[#allocation2 + $0x38] ss:$12 sps:$4 sm:$0xff]  }
  0xc7   :  { %4143 = vmatprep.subr.bf16.mxu0 %v6534_v33  ;;  %v6606_v32 = vld [vmem:[#allocation2 + $0x64c] ss:$12 sps:$4 sm:$0xff]   ;;  %v6607_v33 = vld [vmem:[#allocation2 + $0x110] ss:$12 sps:$4 sm:$0xff]  }
  0xc9   :  { %4062 = vmatpush1.bf16.msra.mxu1 %v6529_v37  ;;  %v6611_v37 = vld [vmem:[#allocation2 + $0x664] ss:$12 sps:$4 sm:$0xff]  }
  0xca   :  { %4144 = vmatpush1.bf16.msra.mxu0 %v6532_v38  ;;  %4063 = vmatprep.subr.bf16.mxu1 %v6537_v40  ;;  %v6612_v38 = vld [vmem:[#allocation2 + $0x128] ss:$12 sps:$4 sm:$0xff]   ;;  %v6609_v40 = vld [vmem:[#allocation2 + $0x660] ss:$12 sps:$4 sm:$0xff]  }
  0xcb   :  { %4145 = vmatprep.subr.bf16.mxu0 %v6540_v41 }
  0xcd   :  { %4064 = vmatpush1.bf16.msra.mxu1 %v6535_v42  ;;  %v6613_v42 = vld [vmem:[#allocation2 + $0x68] ss:$12 sps:$4 sm:$0xff]  }
  0xce   :  { %4146 = vmatpush1.bf16.msra.mxu0 %v6538_v43  ;;  %4065 = vmatprep.subr.bf16.mxu1 %v6543_v44  ;;  %v6616_v43 = vld [vmem:[#allocation2 + $0x67c] ss:$12 sps:$4 sm:$0xff]   ;;  %v6617_v44 = vld [vmem:[#allocation2 + $0x140] ss:$12 sps:$4 sm:$0xff]  }
  0xcf   :  { %4147 = vmatprep.subr.bf16.mxu0 %v6546_v45  ;;  %v6614_v45 = vld [vmem:[#allocation2 + $0x678] ss:$12 sps:$4 sm:$0xff]  }
  0xd1   :  { %4066 = vmatpush1.bf16.msra.mxu1 %v6541_v46  ;;  %v6618_v46 = vld [vmem:[#allocation2 + $0x80] ss:$12 sps:$4 sm:$0xff]  }
  0xd2   :  { %4148 = vmatpush1.bf16.msra.mxu0 %v6544_v47  ;;  %4067 = vmatprep.subr.bf16.mxu1 %v6549_v49  ;;  %v6621_v47 = vld [vmem:[#allocation2 + $0x694] ss:$12 sps:$4 sm:$0xff]   ;;  %v6622_v49 = vld [vmem:[#allocation2 + $0x158] ss:$12 sps:$4 sm:$0xff]  }
  0xd3   :  { %4149 = vmatprep.subr.bf16.mxu0 %v6552_v50  ;;  %v6619_v50 = vld [vmem:[#allocation2 + $0x690] ss:$12 sps:$4 sm:$0xff]  }
  0xd5   :  { %4068 = vmatpush1.bf16.msra.mxu1 %v6547_v51  ;;  %v6623_v51 = vld [vmem:[#allocation2 + $0x98] ss:$12 sps:$4 sm:$0xff]  }
  0xd6   :  { %4150 = vmatpush1.bf16.msra.mxu0 %v6550_v52  ;;  %4069 = vmatprep.subr.bf16.mxu1 %v6555_v54  ;;  %v6626_v52 = vld [vmem:[#allocation2 + $0x6ac] ss:$12 sps:$4 sm:$0xff]   ;;  %v6627_v54 = vld [vmem:[#allocation2 + $0x170] ss:$12 sps:$4 sm:$0xff]  }
  0xd7   :  { %4151 = vmatprep.subr.bf16.mxu0 %v6558_v55  ;;  %v6624_v55 = vld [vmem:[#allocation2 + $0x6a8] ss:$12 sps:$4 sm:$0xff]  }
  0xd9   :  { %4070 = vmatpush1.bf16.msra.mxu1 %v6553_v56  ;;  %v6628_v56 = vld [vmem:[#allocation2 + $0xb0] ss:$12 sps:$4 sm:$0xff]  }
  0xda   :  { %4152 = vmatpush1.bf16.msra.mxu0 %v6556_v57  ;;  %4071 = vmatprep.subr.bf16.mxu1 %v6561_v58  ;;  %v6631_v57 = vld [vmem:[#allocation2 + $0x6c4] ss:$12 sps:$4 sm:$0xff]   ;;  %v6632_v58 = vld [vmem:[#allocation2 + $0x248] ss:$12 sps:$4 sm:$0xff]  }
  0xdb   :  { %4153 = vmatprep.subr.bf16.mxu0 %v6564_v59  ;;  %v6629_v59 = vld [vmem:[#allocation2 + $0x6c0] ss:$12 sps:$4 sm:$0xff]  }
  0xdd   :  { %4072 = vmatpush1.bf16.msra.mxu1 %v6559_v60  ;;  %v6633_v60 = vld [vmem:[#allocation2 + $0x188] ss:$12 sps:$4 sm:$0xff]  }
  0xde   :  { %4154 = vmatpush1.bf16.msra.mxu0 %v6562_v61  ;;  %4073 = vmatprep.subr.bf16.mxu1 %v6567_v62  ;;  %v6636_v61 = vld [vmem:[#allocation2 + $0x6dc] ss:$12 sps:$4 sm:$0xff]   ;;  %v6637_v62 = vld [vmem:[#allocation2 + $0x260] ss:$12 sps:$4 sm:$0xff]  }
  0xdf   :  { %4155 = vmatprep.subr.bf16.mxu0 %v6570_v63  ;;  %v6634_v63 = vld [vmem:[#allocation2 + $0x6d8] ss:$12 sps:$4 sm:$0xff]  }
  0xe1   :  { %4074 = vmatpush1.bf16.msra.mxu1 %v6565_v0  ;;  %v6638_v0 = vld [vmem:[#allocation2 + $0x1a0] ss:$12 sps:$4 sm:$0xff]  }
  0xe2   :  { %4156 = vmatpush1.bf16.msra.mxu0 %v6568_v1  ;;  %4075 = vmatprep.subr.bf16.mxu1 %v6573_v2  ;;  %v6641_v1 = vld [vmem:[#allocation2 + $0x6f4] ss:$12 sps:$4 sm:$0xff]   ;;  %v6642_v2 = vld [vmem:[#allocation2 + $0x278] ss:$12 sps:$4 sm:$0xff]  }
  0xe3   :  { %4157 = vmatprep.subr.bf16.mxu0 %v6576_v3  ;;  %v6639_v3 = vld [vmem:[#allocation2 + $0x6f0] ss:$12 sps:$4 sm:$0xff]  }
  0xe5   :  { %4076 = vmatpush1.bf16.msra.mxu1 %v6571_v4  ;;  %v6643_v4 = vld [vmem:[#allocation2 + $0x1b8] ss:$12 sps:$4 sm:$0xff]  }
  0xe6   :  { %4158 = vmatpush1.bf16.msra.mxu0 %v6574_v5  ;;  %4077 = vmatprep.subr.bf16.mxu1 %v6579_v6  ;;  %v6646_v5 = vld [vmem:[#allocation2 + $0x70c] ss:$12 sps:$4 sm:$0xff]   ;;  %v6647_v6 = vld [vmem:[#allocation2 + $0x290] ss:$12 sps:$4 sm:$0xff]  }
  0xe7   :  { %4159 = vmatprep.subr.bf16.mxu0 %v6582_v7  ;;  %v6644_v7 = vld [vmem:[#allocation2 + $0x708] ss:$12 sps:$4 sm:$0xff]  }
  0xe9   :  { %4078 = vmatpush1.bf16.msra.mxu1 %v6577_v8  ;;  %v6648_v8 = vld [vmem:[#allocation2 + $0x1d0] ss:$12 sps:$4 sm:$0xff]  }
  0xea   :  { %4160 = vmatpush1.bf16.msra.mxu0 %v6580_v9  ;;  %4079 = vmatprep.subr.bf16.mxu1 %v6585_v12  ;;  %v6652_v9 = vld [vmem:[#allocation2 + $0x2a8] ss:$12 sps:$4 sm:$0xff]   ;;  %v6649_v12 = vld [vmem:[#allocation2 + $0x720] ss:$12 sps:$4 sm:$0xff]  }
  0xeb   :  { %4161 = vmatprep.subr.bf16.mxu0 %v6588_v13  ;;  %v6656_v13 = vld [vmem:[#allocation2 + $0x73c] ss:$12 sps:$4 sm:$0xff]  }
  0xed   :  { %4080 = vmatpush1.bf16.msra.mxu1 %v6583_v14  ;;  %v6657_v14 = vld [vmem:[#allocation2 + $0x2c0] ss:$12 sps:$4 sm:$0xff]  }
  0xee   :  { %4162 = vmatpush1.bf16.msra.mxu0 %v6586_v15  ;;  %5997 = vmatprep.subr.bf16.mxu1 %v6592_v19  ;;  %v6654_v15 = vld [vmem:[#allocation2 + $0x738] ss:$12 sps:$4 sm:$0xff]   ;;  %v6659_v19 = vld [vmem:[#allocation2 + $0x750] ss:$12 sps:$4 sm:$0xff]  }
  0xef   :  { %4172 = vmatprep.subr.bf16.mxu0 %v6591_v18  ;;  %v6662_v18 = vld [vmem:[#allocation2 + $0x2d8] ss:$12 sps:$4 sm:$0xff]  }
  0xf0   :  { %4082 = vmatmul.mubr.bf16.vlgmr.msra.gmra.mrb[0].mxu1 %v7504_v21 }
  0xf1   :  { %4164 = vmatmul.mubr.bf16.vlgmr.msra.gmra.mrb[0].mxu0 %v7506_v22  ;;  %5998 = vmatpush3.bf16.msra.mxu1 %v6593_v23  ;;  %v6666_v23 = vld [vmem:[#allocation2 + $0x76c] ss:$12 sps:$4 sm:$0xff]  }
  0xf2   :  { %4173 = vmatpush1.bf16.msra.mxu0 %v6589_v20  ;;  %5999 = vmatprep.subr.bf16.mxu1 %v6597_v25  ;;  %v6663_v20 = vld [vmem:[#allocation2 + $0x218] ss:$12 sps:$4 sm:$0xff]   ;;  %v6664_v25 = vld [vmem:[#allocation2 + $0x768] ss:$12 sps:$4 sm:$0xff]  }
  0xf3   :  { %4174 = vmatprep.subr.bf16.mxu0 %v6596_v24  ;;  %4532 = vmatprep.mubr.bf16.mxu1 %v7465_v48  ;;  %v112_v48 = vld [vmem:[%s7665_s0 + $0x48] sm:$0xff]  ;;  %v6667_v24 = vld [vmem:[#allocation2 + $0x2f0] ss:$12 sps:$4 sm:$0xff]  }
  0xf4   :  { %v7514_v41 = vpack.c.bf16 %v112_v48, %v112_v48  ;;  %v6681_v48 = vld [vmem:[#allocation2 + $0x7b4] ss:$12 sps:$4 sm:$0xff]  }
  0xf5   :  { %6000 = vmatpush3.bf16.msra.mxu1 %v6598_v27  ;;  %v111_v27 = vld [vmem:[%s7665_s0 + $0x40] sm:$0xff] }
  0xf6   :  { %4175 = vmatpush1.bf16.msra.mxu0 %v6594_v26  ;;  %6001 = vmatprep.subr.bf16.mxu1 %v6602_v29  ;;  %v6668_v26 = vld [vmem:[#allocation2 + $0x230] ss:$12 sps:$4 sm:$0xff]   ;;  %v6672_v29 = vld [vmem:[#allocation2 + $0x3c8] ss:$12 sps:$4 sm:$0xff]  }
  0xf7   :  { %4176 = vmatprep.subr.bf16.mxu0 %v6601_v28  ;;  %4204 = vmatprep.mubr.bf16.mxu0 %v7514_v41  ;;  %v6671_v28 = vld [vmem:[#allocation2 + $0x784] ss:$12 sps:$4 sm:$0xff]  }
  0xf9   :  { %6002 = vmatpush3.bf16.msra.mxu1 %v6603_v31  ;;  %v7522_v31 = vpack.c.bf16 %v111_v27, %v111_v27  ;;  %v6739_v27 = vld [vmem:[#allocation2 + $0x8d0] ss:$12 sps:$4 sm:$0xff]  }
  0xfa   :  { %4177 = vmatpush1.bf16.msra.mxu0 %v6599_v30  ;;  %6003 = vmatprep.subr.bf16.mxu1 %v6607_v33  ;;  %v6669_v30 = vld [vmem:[#allocation2 + $0x780] ss:$12 sps:$4 sm:$0xff]   ;;  %v6676_v33 = vld [vmem:[#allocation2 + $0x79c] ss:$12 sps:$4 sm:$0xff]  }
  0xfb   :  { %4178 = vmatprep.subr.bf16.mxu0 %v6606_v32  ;;  %v6673_v32 = vld [vmem:[#allocation2 + $0x308] ss:$12 sps:$4 sm:$0xff]  }
  0xfd   :  { %6004 = vmatpush3.bf16.msra.mxu1 %v6608_v36  ;;  %v6674_v36 = vld [vmem:[#allocation2 + $0x798] ss:$12 sps:$4 sm:$0xff]  }
  0xfe   :  { %4179 = vmatpush1.bf16.msra.mxu0 %v6604_v34  ;;  %6005 = vmatprep.subr.bf16.mxu1 %v6612_v38  ;;  %v6677_v34 = vld [vmem:[#allocation2 + $0x3e0] ss:$12 sps:$4 sm:$0xff]  }
  0xff   :  { %4180 = vmatprep.subr.bf16.mxu0 %v6611_v37  ;;  %v114_v37 = vld [vmem:[%s7665_s0 + $0x58] sm:$0xff]  ;;  %v6678_v38 = vld [vmem:[#allocation2 + $0x320] ss:$12 sps:$4 sm:$0xff]  }
 0x101   :  { %6006 = vmatpush3.bf16.msra.mxu1 %v6613_v42  ;;  %v6682_v42 = vld [vmem:[#allocation2 + $0x3f8] ss:$12 sps:$4 sm:$0xff]  }
 0x102   :  { %4181 = vmatpush1.bf16.msra.mxu0 %v6609_v40  ;;  %6007 = vmatprep.subr.bf16.mxu1 %v6617_v44  ;;  %v7529_v40 = vpack.c.bf16 %v114_v37, %v114_v37  ;;  %v6686_v44 = vld [vmem:[#allocation2 + $0x7cc] ss:$12 sps:$4 sm:$0xff]   ;;  %v6752_v37 = vld [vmem:[#allocation2 + $0x6c8] ss:$12 sps:$4 sm:$0xff]  }
 0x103   :  { %4182 = vmatprep.subr.bf16.mxu0 %v6616_v43  ;;  %v6679_v43 = vld [vmem:[#allocation2 + $0x7b0] ss:$12 sps:$4 sm:$0xff]  }
 0x105   :  { %6008 = vmatpush3.bf16.msra.mxu1 %v6618_v46  ;;  %v6684_v46 = vld [vmem:[#allocation2 + $0x7c8] ss:$12 sps:$4 sm:$0xff]  }
 0x106   :  { %4183 = vmatpush1.bf16.msra.mxu0 %v6614_v45  ;;  %6009 = vmatprep.subr.bf16.mxu1 %v6622_v49  ;;  %v6687_v45 = vld [vmem:[#allocation2 + $0x410] ss:$12 sps:$4 sm:$0xff]  }
 0x107   :  { %4184 = vmatprep.subr.bf16.mxu0 %v6621_v47  ;;  %v6688_v47 = vld [vmem:[#allocation2 + $0x350] ss:$12 sps:$4 sm:$0xff]  }
 0x108   :  { %v6691_v49 = vld [vmem:[#allocation2 + $0x7e4] ss:$12 sps:$4 sm:$0xff]  }
 0x109   :  { %6010 = vmatpush3.bf16.msra.mxu1 %v6623_v51  ;;  %v6689_v51 = vld [vmem:[#allocation2 + $0x7e0] ss:$12 sps:$4 sm:$0xff]  }
 0x10a   :  { %4185 = vmatpush1.bf16.msra.mxu0 %v6619_v50  ;;  %6011 = vmatprep.subr.bf16.mxu1 %v6627_v54  ;;  %v6692_v50 = vld [vmem:[#allocation2 + $0x428] ss:$12 sps:$4 sm:$0xff]   ;;  %v6697_v54 = vld [vmem:[#allocation2 + $0x440] ss:$12 sps:$4 sm:$0xff]  }
 0x10b   :  { %4186 = vmatprep.subr.bf16.mxu0 %v6626_v52  ;;  %v6696_v52 = vld [vmem:[#allocation2 + $0x7fc] ss:$12 sps:$4 sm:$0xff]  }
 0x10d   :  { %6012 = vmatpush3.bf16.msra.mxu1 %v6628_v56  ;;  %v6698_v56 = vld [vmem:[#allocation2 + $0x380] ss:$12 sps:$4 sm:$0xff]  }
 0x10e   :  { %4187 = vmatpush1.bf16.msra.mxu0 %v6624_v55  ;;  %6019 = vmatprep.subr.bf16.mxu1 %v6632_v58  ;;  %v6694_v55 = vld [vmem:[#allocation2 + $0x7f8] ss:$12 sps:$4 sm:$0xff]  }
 0x10f   :  { %4188 = vmatprep.subr.bf16.mxu0 %v6631_v57  ;;  %v6701_v57 = vld [vmem:[#allocation2 + $0x814] ss:$12 sps:$4 sm:$0xff]   ;;  %v6702_v58 = vld [vmem:[#allocation2 + $0x458] ss:$12 sps:$4 sm:$0xff]  }
 0x110   :  { %4533 = vmatmul.mubr.bf16.vlgmr.msra.gmra.mrb[4].mxu1 %v7480_v10  ;;  %v6651_v10 = vld [vmem:[#allocation2 + $0x724] ss:$12 sps:$4 sm:$0xff]  }
 0x111   :  { %6020 = vmatpush3.bf16.msra.mxu1 %v6633_v60  ;;  %4572 = vmatprep.mubr.bf16.mxu1 %v7489_v35  ;;  %v6653_v35 = vld [vmem:[#allocation2 + $0x1e8] ss:$12 sps:$4 sm:$0xff]   ;;  %v6703_v60 = vld [vmem:[#allocation2 + $0x398] ss:$12 sps:$4 sm:$0xff]  }
 0x112   :  { %4189 = vmatpush1.bf16.msra.mxu0 %v6629_v59  ;;  %6021 = vmatprep.subr.bf16.mxu1 %v6637_v62  ;;  %v6699_v59 = vld [vmem:[#allocation2 + $0x810] ss:$12 sps:$4 sm:$0xff]  }
 0x113   :  { %4190 = vmatprep.subr.bf16.mxu0 %v6636_v61  ;;  %v6706_v61 = vld [vmem:[#allocation2 + $0x82c] ss:$12 sps:$4 sm:$0xff]   ;;  %v6707_v62 = vld [vmem:[#allocation2 + $0x470] ss:$12 sps:$4 sm:$0xff]  }
 0x115   :  { %6022 = vmatpush3.bf16.msra.mxu1 %v6638_v0  ;;  %v6708_v0 = vld [vmem:[#allocation2 + $0x3b0] ss:$12 sps:$4 sm:$0xff]  }
 0x116   :  { %4191 = vmatpush1.bf16.msra.mxu0 %v6634_v63  ;;  %6023 = vmatprep.subr.bf16.mxu1 %v6642_v2  ;;  %v6704_v63 = vld [vmem:[#allocation2 + $0x828] ss:$12 sps:$4 sm:$0xff]  }
 0x117   :  { %4192 = vmatprep.subr.bf16.mxu0 %v6641_v1  ;;  %v6711_v1 = vld [vmem:[#allocation2 + $0x844] ss:$12 sps:$4 sm:$0xff]   ;;  %v6712_v2 = vld [vmem:[#allocation2 + $0x548] ss:$12 sps:$4 sm:$0xff]  }
 0x119   :  { %6024 = vmatpush3.bf16.msra.mxu1 %v6643_v4  ;;  %v6713_v4 = vld [vmem:[#allocation2 + $0x488] ss:$12 sps:$4 sm:$0xff]  }
 0x11a   :  { %4193 = vmatpush1.bf16.msra.mxu0 %v6639_v3  ;;  %6025 = vmatprep.subr.bf16.mxu1 %v6647_v6  ;;  %v6709_v3 = vld [vmem:[#allocation2 + $0x840] ss:$12 sps:$4 sm:$0xff]  }
 0x11b   :  { %4194 = vmatprep.subr.bf16.mxu0 %v6646_v5  ;;  %v6716_v5 = vld [vmem:[#allocation2 + $0x85c] ss:$12 sps:$4 sm:$0xff]   ;;  %v6717_v6 = vld [vmem:[#allocation2 + $0x560] ss:$12 sps:$4 sm:$0xff]  }
 0x11d   :  { %6026 = vmatpush3.bf16.msra.mxu1 %v6648_v8  ;;  %v6718_v8 = vld [vmem:[#allocation2 + $0x4a0] ss:$12 sps:$4 sm:$0xff]  }
 0x11e   :  { %4195 = vmatpush1.bf16.msra.mxu0 %v6644_v7  ;;  %6027 = vmatprep.subr.bf16.mxu1 %v6652_v9  ;;  %v6714_v7 = vld [vmem:[#allocation2 + $0x858] ss:$12 sps:$4 sm:$0xff]  }
 0x11f   :  { %4196 = vmatprep.subr.bf16.mxu0 %v6651_v10  ;;  %v6721_v10 = vld [vmem:[#allocation2 + $0x874] ss:$12 sps:$4 sm:$0xff]   ;;  %v6722_v9 = vld [vmem:[#allocation2 + $0x578] ss:$12 sps:$4 sm:$0xff]  }
 0x121   :  { %6028 = vmatpush3.bf16.msra.mxu1 %v6653_v35  ;;  %v6723_v35 = vld [vmem:[#allocation2 + $0x4b8] ss:$12 sps:$4 sm:$0xff]  }
 0x122   :  { %4197 = vmatpush1.bf16.msra.mxu0 %v6649_v12  ;;  %6029 = vmatprep.subr.bf16.mxu1 %v6657_v14  ;;  %v6719_v12 = vld [vmem:[#allocation2 + $0x870] ss:$12 sps:$4 sm:$0xff]  }
 0x123   :  { %4198 = vmatprep.subr.bf16.mxu0 %v6656_v13  ;;  %v6726_v13 = vld [vmem:[#allocation2 + $0x88c] ss:$12 sps:$4 sm:$0xff]   ;;  %v6727_v14 = vld [vmem:[#allocation2 + $0x590] ss:$12 sps:$4 sm:$0xff]  }
 0x125   :  { %6030 = vmatpush3.bf16.msra.mxu1 %v6658_v16  ;;  %v6728_v16 = vld [vmem:[#allocation2 + $0x4d0] ss:$12 sps:$4 sm:$0xff]  }
 0x126   :  { %4199 = vmatpush1.bf16.msra.mxu0 %v6654_v15  ;;  %6031 = vmatprep.subr.bf16.mxu1 %v6662_v18  ;;  %v6724_v15 = vld [vmem:[#allocation2 + $0x888] ss:$12 sps:$4 sm:$0xff]   ;;  %v6729_v18 = vld [vmem:[#allocation2 + $0x8a0] ss:$12 sps:$4 sm:$0xff]  }
 0x127   :  { %4200 = vmatprep.subr.bf16.mxu0 %v6661_v17  ;;  %v6732_v17 = vld [vmem:[#allocation2 + $0x5a8] ss:$12 sps:$4 sm:$0xff]  }
 0x129   :  { %6032 = vmatpush3.bf16.msra.mxu1 %v6663_v20  ;;  %v6737_v20 = vld [vmem:[#allocation2 + $0x5c0] ss:$12 sps:$4 sm:$0xff]  }
 0x12a   :  { %4201 = vmatpush1.bf16.msra.mxu0 %v6659_v19  ;;  %6033 = vmatprep.subr.bf16.mxu1 %v6667_v24  ;;  %v6736_v19 = vld [vmem:[#allocation2 + $0x8bc] ss:$12 sps:$4 sm:$0xff]   ;;  %v6738_v24 = vld [vmem:[#allocation2 + $0x500] ss:$12 sps:$4 sm:$0xff]  }
 0x12b   :  { %4202 = vmatprep.subr.bf16.mxu0 %v6666_v23  ;;  %v6734_v23 = vld [vmem:[#allocation2 + $0x8b8] ss:$12 sps:$4 sm:$0xff]  }
 0x12d   :  { %6034 = vmatpush3.bf16.msra.mxu1 %v6668_v26  ;;  %v6742_v26 = vld [vmem:[#allocation2 + $0x5d8] ss:$12 sps:$4 sm:$0xff]  }
 0x12e   :  { %4203 = vmatpush1.bf16.msra.mxu0 %v6664_v25  ;;  %6041 = vmatprep.subr.bf16.mxu1 %v6672_v29  ;;  %v6741_v25 = vld [vmem:[#allocation2 + $0x8d4] ss:$12 sps:$4 sm:$0xff]   ;;  %v6746_v29 = vld [vmem:[#allocation2 + $0x8ec] ss:$12 sps:$4 sm:$0xff]  }
 0x12f   :  { %4213 = vmatprep.subr.bf16.mxu0 %v6671_v28  ;;  %v6743_v28 = vld [vmem:[#allocation2 + $0x518] ss:$12 sps:$4 sm:$0xff]  }
 0x130   :  { %4573 = vmatmul.mubr.bf16.vlgmr.msra.gmra.mrb[8].mxu1 %v7504_v21  ;;  %v6683_v21 = vld [vmem:[#allocation2 + $0x338] ss:$12 sps:$4 sm:$0xff]  }
 0x131   :  { %4205 = vmatmul.mubr.bf16.vlgmr.msra.gmra.mrb[0].mxu0 %v7522_v31  ;;  %6042 = vmatpush3.bf16.msra.mxu1 %v6673_v32  ;;  %v6744_v32 = vld [vmem:[#allocation2 + $0x8e8] ss:$12 sps:$4 sm:$0xff]  }
 0x132   :  { %4214 = vmatpush1.bf16.msra.mxu0 %v6669_v30  ;;  %6043 = vmatprep.subr.bf16.mxu1 %v6677_v34  ;;  %v6747_v30 = vld [vmem:[#allocation2 + $0x5f0] ss:$12 sps:$4 sm:$0xff]  }
 0x133   :  { %4215 = vmatprep.subr.bf16.mxu0 %v6676_v33  ;;  %4612 = vmatprep.mubr.bf16.mxu1 %v7470_v53  ;;  %v6693_v53 = vld [vmem:[#allocation2 + $0x368] ss:$12 sps:$4 sm:$0xff]   ;;  %v6748_v33 = vld [vmem:[#allocation2 + $0x530] ss:$12 sps:$4 sm:$0xff]  }
 0x134   :  { %4245 = vmatprep.mubr.bf16.mxu0 %v7529_v40  ;;  %v6751_v34 = vld [vmem:[#allocation2 + $0x904] ss:$12 sps:$4 sm:$0xff]  }
 0x135   :  { %6044 = vmatpush3.bf16.msra.mxu1 %v6678_v38  ;;  %v6749_v38 = vld [vmem:[#allocation2 + $0x900] ss:$12 sps:$4 sm:$0xff]  }
 0x136   :  { %4216 = vmatpush1.bf16.msra.mxu0 %v6674_v36  ;;  %6045 = vmatprep.subr.bf16.mxu1 %v6682_v42  ;;  %v113_v36 = vld [vmem:[%s7665_s0 + $0x50] sm:$0xff]  ;;  %v116_v42 = vld [vmem:[%s7665_s0 + $0x68] sm:$0xff] }
 0x137   :  { %4217 = vmatprep.subr.bf16.mxu0 %v6681_v48  ;;  %v7538_v48 = vpack.c.bf16 %v113_v36, %v113_v36  ;;  %v6827_v36 = vld [vmem:[#allocation2 + $0x8f0] ss:$12 sps:$4 sm:$0xff]  }
 0x139   :  { %6046 = vmatpush3.bf16.msra.mxu1 %v6683_v21  ;;  %v6756_v21 = vld [vmem:[#allocation2 + $0x91c] ss:$12 sps:$4 sm:$0xff]  }
 0x13a   :  { %4218 = vmatpush1.bf16.msra.mxu0 %v6679_v43  ;;  %6047 = vmatprep.subr.bf16.mxu1 %v6687_v45  ;;  %v6753_v43 = vld [vmem:[#allocation2 + $0x608] ss:$12 sps:$4 sm:$0xff]   ;;  %v6754_v45 = vld [vmem:[#allocation2 + $0x918] ss:$12 sps:$4 sm:$0xff]  }
 0x13b   :  { %4219 = vmatprep.subr.bf16.mxu0 %v6686_v44  ;;  %v6757_v44 = vld [vmem:[#allocation2 + $0x6e0] ss:$12 sps:$4 sm:$0xff]  }
 0x13d   :  { %6048 = vmatpush3.bf16.msra.mxu1 %v6688_v47  ;;  %v6758_v47 = vld [vmem:[#allocation2 + $0x620] ss:$12 sps:$4 sm:$0xff]  }
 0x13e   :  { %4220 = vmatpush1.bf16.msra.mxu0 %v6684_v46  ;;  %6049 = vmatprep.subr.bf16.mxu1 %v6692_v50  ;;  %v7543_v46 = vpack.c.bf16 %v116_v42, %v116_v42  ;;  %v6762_v50 = vld [vmem:[#allocation2 + $0x6f8] ss:$12 sps:$4 sm:$0xff]  }
 0x13f   :  { %4221 = vmatprep.subr.bf16.mxu0 %v6691_v49  ;;  %v6761_v49 = vld [vmem:[#allocation2 + $0x934] ss:$12 sps:$4 sm:$0xff]   ;;  %v6831_v42 = vld [vmem:[#allocation2 + $0xa84] ss:$12 sps:$4 sm:$0xff]  }
 0x141   :  { %6050 = vmatpush3.bf16.msra.mxu1 %v6693_v53  ;;  %v6763_v53 = vld [vmem:[#allocation2 + $0x638] ss:$12 sps:$4 sm:$0xff]  }
 0x142   :  { %4222 = vmatpush1.bf16.msra.mxu0 %v6689_v51  ;;  %6051 = vmatprep.subr.bf16.mxu1 %v6697_v54  ;;  %v6759_v51 = vld [vmem:[#allocation2 + $0x930] ss:$12 sps:$4 sm:$0xff]  }
 0x143   :  { %4223 = vmatprep.subr.bf16.mxu0 %v6696_v52  ;;  %v6766_v52 = vld [vmem:[#allocation2 + $0x94c] ss:$12 sps:$4 sm:$0xff]   ;;  %v6767_v54 = vld [vmem:[#allocation2 + $0x710] ss:$12 sps:$4 sm:$0xff]  }
 0x145   :  { %6052 = vmatpush3.bf16.msra.mxu1 %v6698_v56  ;;  %v6771_v56 = vld [vmem:[#allocation2 + $0x964] ss:$12 sps:$4 sm:$0xff]  }
 0x146   :  { %4224 = vmatpush1.bf16.msra.mxu0 %v6694_v55  ;;  %6053 = vmatprep.subr.bf16.mxu1 %v6702_v58  ;;  %v6768_v55 = vld [vmem:[#allocation2 + $0x650] ss:$12 sps:$4 sm:$0xff]   ;;  %v6769_v58 = vld [vmem:[#allocation2 + $0x960] ss:$12 sps:$4 sm:$0xff]  }
 0x147   :  { %4225 = vmatprep.subr.bf16.mxu0 %v6701_v57  ;;  %v6772_v57 = vld [vmem:[#allocation2 + $0x728] ss:$12 sps:$4 sm:$0xff]  }
 0x149   :  { %6054 = vmatpush3.bf16.msra.mxu1 %v6703_v60  ;;  %v6777_v60 = vld [vmem:[#allocation2 + $0x740] ss:$12 sps:$4 sm:$0xff]  }
 0x14a   :  { %4226 = vmatpush1.bf16.msra.mxu0 %v6699_v59  ;;  %6055 = vmatprep.subr.bf16.mxu1 %v6707_v62  ;;  %v6776_v59 = vld [vmem:[#allocation2 + $0x97c] ss:$12 sps:$4 sm:$0xff]   ;;  %v6778_v62 = vld [vmem:[#allocation2 + $0x680] ss:$12 sps:$4 sm:$0xff]  }
 0x14b   :  { %4227 = vmatprep.subr.bf16.mxu0 %v6706_v61  ;;  %v6774_v61 = vld [vmem:[#allocation2 + $0x978] ss:$12 sps:$4 sm:$0xff]  }
 0x14d   :  { %6056 = vmatpush3.bf16.msra.mxu1 %v6708_v0  ;;  %v6782_v0 = vld [vmem:[#allocation2 + $0x758] ss:$12 sps:$4 sm:$0xff]  }
 0x14e   :  { %4228 = vmatpush1.bf16.msra.mxu0 %v6704_v63  ;;  %6063 = vmatprep.subr.bf16.mxu1 %v6712_v2  ;;  %v6781_v63 = vld [vmem:[#allocation2 + $0x994] ss:$12 sps:$4 sm:$0xff]   ;;  %v6783_v2 = vld [vmem:[#allocation2 + $0x698] ss:$12 sps:$4 sm:$0xff]  }
 0x14f   :  { %4229 = vmatprep.subr.bf16.mxu0 %v6711_v1  ;;  %v6779_v1 = vld [vmem:[#allocation2 + $0x990] ss:$12 sps:$4 sm:$0xff]  }
 0x150   :  { %4613 = vmatmul.mubr.bf16.vlgmr.msra.gmra.mrb[12].mxu1 %v7482_v11  ;;  %v6731_v11 = vld [vmem:[#allocation2 + $0x8a4] ss:$12 sps:$4 sm:$0xff]  }
 0x151   :  { %6064 = vmatpush3.bf16.msra.mxu1 %v6713_v4  ;;  %4652 = vmatprep.mubr.bf16.mxu1 %v7494_v39  ;;  %v6733_v39 = vld [vmem:[#allocation2 + $0x4e8] ss:$12 sps:$4 sm:$0xff]   ;;  %v6787_v4 = vld [vmem:[#allocation2 + $0x770] ss:$12 sps:$4 sm:$0xff]  }
 0x152   :  { %4230 = vmatpush1.bf16.msra.mxu0 %v6709_v3  ;;  %6065 = vmatprep.subr.bf16.mxu1 %v6717_v6  ;;  %v6786_v3 = vld [vmem:[#allocation2 + $0x9ac] ss:$12 sps:$4 sm:$0xff]   ;;  %v6788_v6 = vld [vmem:[#allocation2 + $0x6b0] ss:$12 sps:$4 sm:$0xff]  }
 0x153   :  { %4231 = vmatprep.subr.bf16.mxu0 %v6716_v5  ;;  %v6784_v5 = vld [vmem:[#allocation2 + $0x9a8] ss:$12 sps:$4 sm:$0xff]  }
 0x155   :  { %6066 = vmatpush3.bf16.msra.mxu1 %v6718_v8  ;;  %v6792_v8 = vld [vmem:[#allocation2 + $0x848] ss:$12 sps:$4 sm:$0xff]  }
 0x156   :  { %4232 = vmatpush1.bf16.msra.mxu0 %v6714_v7  ;;  %6067 = vmatprep.subr.bf16.mxu1 %v6722_v9  ;;  %v6791_v7 = vld [vmem:[#allocation2 + $0x9c4] ss:$12 sps:$4 sm:$0xff]   ;;  %v6793_v9 = vld [vmem:[#allocation2 + $0x788] ss:$12 sps:$4 sm:$0xff]  }
 0x157   :  { %4233 = vmatprep.subr.bf16.mxu0 %v6721_v10  ;;  %v6789_v10 = vld [vmem:[#allocation2 + $0x9c0] ss:$12 sps:$4 sm:$0xff]  }
 0x159   :  { %6068 = vmatpush3.bf16.msra.mxu1 %v6723_v35  ;;  %v6797_v35 = vld [vmem:[#allocation2 + $0x860] ss:$12 sps:$4 sm:$0xff]  }
 0x15a   :  { %4234 = vmatpush1.bf16.msra.mxu0 %v6719_v12  ;;  %6069 = vmatprep.subr.bf16.mxu1 %v6727_v14  ;;  %v6796_v12 = vld [vmem:[#allocation2 + $0x9dc] ss:$12 sps:$4 sm:$0xff]   ;;  %v6798_v14 = vld [vmem:[#allocation2 + $0x7a0] ss:$12 sps:$4 sm:$0xff]  }
 0x15b   :  { %4235 = vmatprep.subr.bf16.mxu0 %v6726_v13  ;;  %v6794_v13 = vld [vmem:[#allocation2 + $0x9d8] ss:$12 sps:$4 sm:$0xff]  }
 0x15d   :  { %6070 = vmatpush3.bf16.msra.mxu1 %v6728_v16  ;;  %v6802_v16 = vld [vmem:[#allocation2 + $0x878] ss:$12 sps:$4 sm:$0xff]  }
 0x15e   :  { %4236 = vmatpush1.bf16.msra.mxu0 %v6724_v15  ;;  %6071 = vmatprep.subr.bf16.mxu1 %v6732_v17  ;;  %v6801_v15 = vld [vmem:[#allocation2 + $0x9f4] ss:$12 sps:$4 sm:$0xff]   ;;  %v6803_v17 = vld [vmem:[#allocation2 + $0x7b8] ss:$12 sps:$4 sm:$0xff]  }
 0x15f   :  { %4237 = vmatprep.subr.bf16.mxu0 %v6731_v11  ;;  %v6799_v11 = vld [vmem:[#allocation2 + $0x9f0] ss:$12 sps:$4 sm:$0xff]  }
 0x161   :  { %6072 = vmatpush3.bf16.msra.mxu1 %v6733_v39  ;;  %v6807_v39 = vld [vmem:[#allocation2 + $0x890] ss:$12 sps:$4 sm:$0xff]  }
 0x162   :  { %4238 = vmatpush1.bf16.msra.mxu0 %v6729_v18  ;;  %6073 = vmatprep.subr.bf16.mxu1 %v6737_v20  ;;  %v6806_v18 = vld [vmem:[#allocation2 + $0xa0c] ss:$12 sps:$4 sm:$0xff]   ;;  %v6808_v20 = vld [vmem:[#allocation2 + $0x7d0] ss:$12 sps:$4 sm:$0xff]  }
 0x163   :  { %4239 = vmatprep.subr.bf16.mxu0 %v6736_v19  ;;  %v6804_v19 = vld [vmem:[#allocation2 + $0xa08] ss:$12 sps:$4 sm:$0xff]  }
 0x165   :  { %6074 = vmatpush3.bf16.msra.mxu1 %v6738_v24  ;;  %v6809_v24 = vld [vmem:[#allocation2 + $0xa20] ss:$12 sps:$4 sm:$0xff]  }
 0x166   :  { %4240 = vmatpush1.bf16.msra.mxu0 %v6734_v23  ;;  %6075 = vmatprep.subr.bf16.mxu1 %v6742_v26  ;;  %v6812_v23 = vld [vmem:[#allocation2 + $0x8a8] ss:$12 sps:$4 sm:$0xff]   ;;  %v6817_v26 = vld [vmem:[#allocation2 + $0x8c0] ss:$12 sps:$4 sm:$0xff]  }
 0x167   :  { %4241 = vmatprep.subr.bf16.mxu0 %v6741_v25  ;;  %v6816_v25 = vld [vmem:[#allocation2 + $0xa3c] ss:$12 sps:$4 sm:$0xff]  }
 0x169   :  { %6076 = vmatpush3.bf16.msra.mxu1 %v6743_v28  ;;  %v6818_v28 = vld [vmem:[#allocation2 + $0x800] ss:$12 sps:$4 sm:$0xff]  }
 0x16a   :  { %4242 = vmatpush1.bf16.msra.mxu0 %v6739_v27  ;;  %6077 = vmatprep.subr.bf16.mxu1 %v6747_v30  ;;  %v6814_v27 = vld [vmem:[#allocation2 + $0xa38] ss:$12 sps:$4 sm:$0xff]  }
 0x16b   :  { %4243 = vmatprep.subr.bf16.mxu0 %v6746_v29  ;;  %v6821_v29 = vld [vmem:[#allocation2 + $0xa54] ss:$12 sps:$4 sm:$0xff]   ;;  %v6822_v30 = vld [vmem:[#allocation2 + $0x8d8] ss:$12 sps:$4 sm:$0xff]  }
 0x16d   :  { %6078 = vmatpush3.bf16.msra.mxu1 %v6748_v33  ;;  %v6823_v33 = vld [vmem:[#allocation2 + $0x818] ss:$12 sps:$4 sm:$0xff]  }
 0x16e   :  { %4244 = vmatpush1.bf16.msra.mxu0 %v6744_v32  ;;  %6085 = vmatprep.subr.bf16.mxu1 %v6752_v37  ;;  %v6819_v32 = vld [vmem:[#allocation2 + $0xa50] ss:$12 sps:$4 sm:$0xff]   ;;  %v6824_v37 = vld [vmem:[#allocation2 + $0xa68] ss:$12 sps:$4 sm:$0xff]  }
 0x16f   :  { %4254 = vmatprep.subr.bf16.mxu0 %v6751_v34  ;;  %v6826_v34 = vld [vmem:[#allocation2 + $0xa6c] ss:$12 sps:$4 sm:$0xff]  }
 0x170   :  { %4653 = vmatmul.mubr.bf16.vlgmr.msra.gmra.mrb[16].mxu1 %v7506_v22  ;;  %v6764_v22 = vld [vmem:[#allocation2 + $0x948] ss:$12 sps:$4 sm:$0xff]  }
 0x171   :  { %4246 = vmatmul.mubr.bf16.vlgmr.msra.gmra.mrb[0].mxu0 %v7538_v48  ;;  %6086 = vmatpush3.bf16.msra.mxu1 %v6753_v43  ;;  %v115_v43 = vld [vmem:[%s7665_s0 + $0x60] sm:$0xff] }
 0x172   :  { %4255 = vmatpush1.bf16.msra.mxu0 %v6749_v38  ;;  %6087 = vmatprep.subr.bf16.mxu1 %v6757_v44  ;;  %v6828_v38 = vld [vmem:[#allocation2 + $0x830] ss:$12 sps:$4 sm:$0xff]   ;;  %v6829_v44 = vld [vmem:[#allocation2 + $0xa80] ss:$12 sps:$4 sm:$0xff]  }
 0x173   :  { %4256 = vmatprep.subr.bf16.mxu0 %v6756_v21  ;;  %4692 = vmatprep.mubr.bf16.mxu1 %v7514_v41  ;;  %v6773_v41 = vld [vmem:[#allocation2 + $0x668] ss:$12 sps:$4 sm:$0xff]  }
 0x174   :  { %4286 = vmatprep.mubr.bf16.mxu0 %v7543_v46  ;;  %v6832_v21 = vld [vmem:[#allocation2 + $0x9c8] ss:$12 sps:$4 sm:$0xff]  }
 0x175   :  { %6088 = vmatpush3.bf16.msra.mxu1 %v6758_v47  ;;  %v118_v47 = vld [vmem:[%s7665_s0 + $0x78] sm:$0xff] }
 0x176   :  { %4257 = vmatpush1.bf16.msra.mxu0 %v6754_v45  ;;  %6089 = vmatprep.subr.bf16.mxu1 %v6762_v50  ;;  %v7554_v45 = vpack.c.bf16 %v115_v43, %v115_v43  ;;  %v6836_v50 = vld [vmem:[#allocation2 + $0xa9c] ss:$12 sps:$4 sm:$0xff]   ;;  %v6902_v43 = vld [vmem:[#allocation2 + $0xbd8] ss:$12 sps:$4 sm:$0xff]  }
 0x177   :  { %4258 = vmatprep.subr.bf16.mxu0 %v6761_v49  ;;  %v6833_v49 = vld [vmem:[#allocation2 + $0x908] ss:$12 sps:$4 sm:$0xff]  }
 0x179   :  { %6090 = vmatpush3.bf16.msra.mxu1 %v6763_v53  ;;  %v6834_v53 = vld [vmem:[#allocation2 + $0xa98] ss:$12 sps:$4 sm:$0xff]  }
 0x17a   :  { %4259 = vmatpush1.bf16.msra.mxu0 %v6759_v51  ;;  %6091 = vmatprep.subr.bf16.mxu1 %v6767_v54  ;;  %v6837_v51 = vld [vmem:[#allocation2 + $0x9e0] ss:$12 sps:$4 sm:$0xff]  }
 0x17b   :  { %4260 = vmatprep.subr.bf16.mxu0 %v6766_v52  ;;  %v7559_v52 = vpack.c.bf16 %v118_v47, %v118_v47  ;;  %v6838_v54 = vld [vmem:[#allocation2 + $0x920] ss:$12 sps:$4 sm:$0xff]   ;;  %v6907_v47 = vld [vmem:[#allocation2 + $0xbf0] ss:$12 sps:$4 sm:$0xff]  }
 0x17d   :  { %6092 = vmatpush3.bf16.msra.mxu1 %v6768_v55  ;;  %v6842_v55 = vld [vmem:[#allocation2 + $0x9f8] ss:$12 sps:$4 sm:$0xff]  }
 0x17e   :  { %4261 = vmatpush1.bf16.msra.mxu0 %v6764_v22  ;;  %6093 = vmatprep.subr.bf16.mxu1 %v6772_v57  ;;  %v6841_v22 = vld [vmem:[#allocation2 + $0xab4] ss:$12 sps:$4 sm:$0xff]   ;;  %v6843_v57 = vld [vmem:[#allocation2 + $0x938] ss:$12 sps:$4 sm:$0xff]  }
 0x17f   :  { %4262 = vmatprep.subr.bf16.mxu0 %v6771_v56  ;;  %v6839_v56 = vld [vmem:[#allocation2 + $0xab0] ss:$12 sps:$4 sm:$0xff]  }
 0x181   :  { %6094 = vmatpush3.bf16.msra.mxu1 %v6773_v41  ;;  %v6847_v41 = vld [vmem:[#allocation2 + $0xa10] ss:$12 sps:$4 sm:$0xff]  }
 0x182   :  { %4263 = vmatpush1.bf16.msra.mxu0 %v6769_v58  ;;  %6095 = vmatprep.subr.bf16.mxu1 %v6777_v60  ;;  %v6846_v58 = vld [vmem:[#allocation2 + $0xacc] ss:$12 sps:$4 sm:$0xff]   ;;  %v6851_v60 = vld [vmem:[#allocation2 + $0xae4] ss:$12 sps:$4 sm:$0xff]  }
 0x183   :  { %4264 = vmatprep.subr.bf16.mxu0 %v6776_v59  ;;  %v6848_v59 = vld [vmem:[#allocation2 + $0x950] ss:$12 sps:$4 sm:$0xff]  }
 0x185   :  { %6096 = vmatpush3.bf16.msra.mxu1 %v6778_v62  ;;  %v6849_v62 = vld [vmem:[#allocation2 + $0xae0] ss:$12 sps:$4 sm:$0xff]  }
 0x186   :  { %4265 = vmatpush1.bf16.msra.mxu0 %v6774_v61  ;;  %6097 = vmatprep.subr.bf16.mxu1 %v6782_v0  ;;  %v6852_v61 = vld [vmem:[#allocation2 + $0xa28] ss:$12 sps:$4 sm:$0xff]   ;;  %v6857_v0 = vld [vmem:[#allocation2 + $0xa40] ss:$12 sps:$4 sm:$0xff]  }
 0x187   :  { %4266 = vmatprep.subr.bf16.mxu0 %v6781_v63  ;;  %v6856_v63 = vld [vmem:[#allocation2 + $0xafc] ss:$12 sps:$4 sm:$0xff]  }
 0x189   :  { %6098 = vmatpush3.bf16.msra.mxu1 %v6783_v2  ;;  %v6858_v2 = vld [vmem:[#allocation2 + $0x980] ss:$12 sps:$4 sm:$0xff]  }
 0x18a   :  { %4267 = vmatpush1.bf16.msra.mxu0 %v6779_v1  ;;  %6099 = vmatprep.subr.bf16.mxu1 %v6787_v4  ;;  %v6854_v1 = vld [vmem:[#allocation2 + $0xaf8] ss:$12 sps:$4 sm:$0xff]  }
 0x18b   :  { %4268 = vmatprep.subr.bf16.mxu0 %v6786_v3  ;;  %v6861_v3 = vld [vmem:[#allocation2 + $0xb14] ss:$12 sps:$4 sm:$0xff]   ;;  %v6862_v4 = vld [vmem:[#allocation2 + $0xa58] ss:$12 sps:$4 sm:$0xff]  }
 0x18d   :  { %6100 = vmatpush3.bf16.msra.mxu1 %v6788_v6  ;;  %v6863_v6 = vld [vmem:[#allocation2 + $0x998] ss:$12 sps:$4 sm:$0xff]  }
 0x18e   :  { %4269 = vmatpush1.bf16.msra.mxu0 %v6784_v5  ;;  %6107 = vmatprep.subr.bf16.mxu1 %v6792_v8  ;;  %v6859_v5 = vld [vmem:[#allocation2 + $0xb10] ss:$12 sps:$4 sm:$0xff]  }
 0x18f   :  { %4270 = vmatprep.subr.bf16.mxu0 %v6791_v7  ;;  %v6866_v7 = vld [vmem:[#allocation2 + $0xb2c] ss:$12 sps:$4 sm:$0xff]   ;;  %v6867_v8 = vld [vmem:[#allocation2 + $0xa70] ss:$12 sps:$4 sm:$0xff]  }
 0x190   :  { %4693 = vmatmul.mubr.bf16.vlgmr.msra.gmra.mrb[20].mxu1 %v7522_v31  ;;  %v6811_v31 = vld [vmem:[#allocation2 + $0xa24] ss:$12 sps:$4 sm:$0xff]  }
 0x191   :  { %6108 = vmatpush3.bf16.msra.mxu1 %v6793_v9  ;;  %4732 = vmatprep.mubr.bf16.mxu1 %v7529_v40  ;;  %v6813_v40 = vld [vmem:[#allocation2 + $0x7e8] ss:$12 sps:$4 sm:$0xff]  }
 0x192   :  { %4271 = vmatpush1.bf16.msra.mxu0 %v6789_v10  ;;  %6109 = vmatprep.subr.bf16.mxu1 %v6797_v35 }
 0x193   :  { %4272 = vmatprep.subr.bf16.mxu0 %v6796_v12  ;;  %v6864_v12 = vld [vmem:[#allocation2 + $0xb28] ss:$12 sps:$4 sm:$0xff]  }
 0x195   :  { %6110 = vmatpush3.bf16.msra.mxu1 %v6798_v14  ;;  %v6871_v14 = vld [vmem:[#allocation2 + $0xb44] ss:$12 sps:$4 sm:$0xff]  }
 0x196   :  { %4273 = vmatpush1.bf16.msra.mxu0 %v6794_v13  ;;  %6111 = vmatprep.subr.bf16.mxu1 %v6802_v16  ;;  %v6868_v13 = vld [vmem:[#allocation2 + $0x9b0] ss:$12 sps:$4 sm:$0xff]  }
 0x197   :  { %4274 = vmatprep.subr.bf16.mxu0 %v6801_v15  ;;  %v6872_v15 = vld [vmem:[#allocation2 + $0xb48] ss:$12 sps:$4 sm:$0xff]  }
 0x199   :  { %6112 = vmatpush3.bf16.msra.mxu1 %v6803_v17  ;;  %v6873_v17 = vld [vmem:[#allocation2 + $0xa88] ss:$12 sps:$4 sm:$0xff]  }
 0x19a   :  { %4275 = vmatpush1.bf16.msra.mxu0 %v6799_v11  ;;  %6113 = vmatprep.subr.bf16.mxu1 %v6807_v39  ;;  %v6869_v11 = vld [vmem:[#allocation2 + $0xb40] ss:$12 sps:$4 sm:$0xff]  }
 0x19b   :  { %4276 = vmatprep.subr.bf16.mxu0 %v6806_v18  ;;  %v6876_v18 = vld [vmem:[#allocation2 + $0xb5c] ss:$12 sps:$4 sm:$0xff]   ;;  %v6877_v39 = vld [vmem:[#allocation2 + $0xb60] ss:$12 sps:$4 sm:$0xff]  }
 0x19d   :  { %6114 = vmatpush3.bf16.msra.mxu1 %v6808_v20  ;;  %v6878_v20 = vld [vmem:[#allocation2 + $0xaa0] ss:$12 sps:$4 sm:$0xff]  }
 0x19e   :  { %4277 = vmatpush1.bf16.msra.mxu0 %v6804_v19  ;;  %6115 = vmatprep.subr.bf16.mxu1 %v6812_v23  ;;  %v6874_v19 = vld [vmem:[#allocation2 + $0xb58] ss:$12 sps:$4 sm:$0xff]  }
 0x19f   :  { %4278 = vmatprep.subr.bf16.mxu0 %v6811_v31  ;;  %v6881_v31 = vld [vmem:[#allocation2 + $0xb74] ss:$12 sps:$4 sm:$0xff]   ;;  %v6882_v23 = vld [vmem:[#allocation2 + $0xb78] ss:$12 sps:$4 sm:$0xff]  }
 0x1a1   :  { %6116 = vmatpush3.bf16.msra.mxu1 %v6813_v40  ;;  %v6883_v40 = vld [vmem:[#allocation2 + $0xab8] ss:$12 sps:$4 sm:$0xff]  }
 0x1a2   :  { %4279 = vmatpush1.bf16.msra.mxu0 %v6809_v24  ;;  %6117 = vmatprep.subr.bf16.mxu1 %v6817_v26  ;;  %v6879_v24 = vld [vmem:[#allocation2 + $0xb70] ss:$12 sps:$4 sm:$0xff]  }
 0x1a3   :  { %4280 = vmatprep.subr.bf16.mxu0 %v6816_v25  ;;  %v6886_v25 = vld [vmem:[#allocation2 + $0xb8c] ss:$12 sps:$4 sm:$0xff]   ;;  %v6887_v26 = vld [vmem:[#allocation2 + $0xb90] ss:$12 sps:$4 sm:$0xff]  }
 0x1a5   :  { %6118 = vmatpush3.bf16.msra.mxu1 %v6818_v28  ;;  %v6888_v28 = vld [vmem:[#allocation2 + $0xad0] ss:$12 sps:$4 sm:$0xff]  }
 0x1a6   :  { %4281 = vmatpush1.bf16.msra.mxu0 %v6814_v27  ;;  %6119 = vmatprep.subr.bf16.mxu1 %v6822_v30  ;;  %v6884_v27 = vld [vmem:[#allocation2 + $0xb88] ss:$12 sps:$4 sm:$0xff]  }
 0x1a7   :  { %4282 = vmatprep.subr.bf16.mxu0 %v6821_v29  ;;  %v6891_v29 = vld [vmem:[#allocation2 + $0xba4] ss:$12 sps:$4 sm:$0xff]   ;;  %v6892_v30 = vld [vmem:[#allocation2 + $0xba8] ss:$12 sps:$4 sm:$0xff]  }
 0x1a9   :  { %6120 = vmatpush3.bf16.msra.mxu1 %v6823_v33  ;;  %v6893_v33 = vld [vmem:[#allocation2 + $0xae8] ss:$12 sps:$4 sm:$0xff]  }
 0x1aa   :  { %4283 = vmatpush1.bf16.msra.mxu0 %v6819_v32  ;;  %6121 = vmatprep.subr.bf16.mxu1 %v6827_v36  ;;  %v6889_v32 = vld [vmem:[#allocation2 + $0xba0] ss:$12 sps:$4 sm:$0xff]  }
 0x1ab   :  { %4284 = vmatprep.subr.bf16.mxu0 %v6826_v34  ;;  %v6896_v34 = vld [vmem:[#allocation2 + $0xbbc] ss:$12 sps:$4 sm:$0xff]   ;;  %v6897_v36 = vld [vmem:[#allocation2 + $0xbc0] ss:$12 sps:$4 sm:$0xff]  }
 0x1ad   :  { %6122 = vmatpush3.bf16.msra.mxu1 %v6828_v38  ;;  %v6898_v38 = vld [vmem:[#allocation2 + $0xb00] ss:$12 sps:$4 sm:$0xff]  }
 0x1ae   :  { %4285 = vmatpush1.bf16.msra.mxu0 %v6824_v37  ;;  %6129 = vmatprep.subr.bf16.mxu1 %v6832_v21  ;;  %v6894_v37 = vld [vmem:[#allocation2 + $0xbb8] ss:$12 sps:$4 sm:$0xff]   ;;  %v6899_v21 = vld [vmem:[#allocation2 + $0xbd0] ss:$12 sps:$4 sm:$0xff]  }
 0x1af   :  { %4295 = vmatprep.subr.bf16.mxu0 %v6831_v42  ;;  %v6901_v42 = vld [vmem:[#allocation2 + $0xbd4] ss:$12 sps:$4 sm:$0xff]  }
 0x1b0   :  { %4733 = vmatmul.mubr.bf16.vlgmr.msra.gmra.mrb[24].mxu1 %v7538_v48  ;;  %v6844_v48 = vld [vmem:[#allocation2 + $0xac8] ss:$12 sps:$4 sm:$0xff]  }
 0x1b1   :  { %4287 = vmatmul.mubr.bf16.vlgmr.msra.gmra.mrb[0].mxu0 %v7554_v45  ;;  %6130 = vmatpush3.bf16.msra.mxu1 %v6833_v49  ;;  %v6904_v49 = vld [vmem:[#allocation2 + $0xbe8] ss:$12 sps:$4 sm:$0xff]  }
 0x1b2   :  { %4296 = vmatpush1.bf16.msra.mxu0 %v6829_v44  ;;  %6131 = vmatprep.subr.bf16.mxu1 %v6837_v51  ;;  %v6903_v44 = vld [vmem:[#allocation2 + $0xb18] ss:$12 sps:$4 sm:$0xff]  }
 0x1b3   :  { %4297 = vmatprep.subr.bf16.mxu0 %v6836_v50  ;;  %4772 = vmatprep.mubr.bf16.mxu1 %v7543_v46  ;;  %v6853_v46 = vld [vmem:[#allocation2 + $0x968] ss:$12 sps:$4 sm:$0xff]   ;;  %v6908_v50 = vld [vmem:[#allocation2 + $0xb30] ss:$12 sps:$4 sm:$0xff]  }
 0x1b4   :  { %4327 = vmatprep.mubr.bf16.mxu0 %v7559_v52  ;;  %v6911_v51 = vld [vmem:[#allocation2 + $0xc04] ss:$12 sps:$4 sm:$0xff]  }
 0x1b5   :  { %6132 = vmatpush3.bf16.msra.mxu1 %v6838_v54  ;;  %v6909_v54 = vld [vmem:[#allocation2 + $0xc00] ss:$12 sps:$4 sm:$0xff]  }
 0x1b6   :  { %4298 = vmatpush1.bf16.msra.mxu0 %v6834_v53  ;;  %6133 = vmatprep.subr.bf16.mxu1 %v6842_v55  ;;  %v117_v53 = vld [vmem:[%s7665_s0 + $0x70] sm:$0xff]  ;;  %v120_v55 = vld [vmem:[%s7665_s0 + $0x88] sm:$0xff] }
 0x1b7   :  { %4299 = vmatprep.subr.bf16.mxu0 %v6841_v22  ;;  %v141_v22 = vpack.c.bf16 %v117_v53, %v117_v53  ;;  %v6954_v53 = vld [vmem:[#allocation2 + $0xcd8] ss:$12 sps:$4 sm:$0xff]  }
 0x1b9   :  { %6134 = vmatpush3.bf16.msra.mxu1 %v6843_v57  ;;  %v6916_v57 = vld [vmem:[#allocation2 + $0xc1c] ss:$12 sps:$4 sm:$0xff]  }
 0x1ba   :  { %4300 = vmatpush1.bf16.msra.mxu0 %v6839_v56  ;;  %6135 = vmatprep.subr.bf16.mxu1 %v6847_v41  ;;  %v6913_v56 = vld [vmem:[#allocation2 + $0xc08] ss:$12 sps:$4 sm:$0xff]   ;;  %v144_v41 = vpack.c.bf16 %v120_v55, %v120_v55  ;;  %v6959_v55 = vld [vmem:[#allocation2 + $0xcf0] ss:$12 sps:$4 sm:$0xff]  }
 0x1bb   :  { %4301 = vmatprep.subr.bf16.mxu0 %v6846_v58  ;;  %v6917_v58 = vld [vmem:[#allocation2 + $0xce0] ss:$12 sps:$4 sm:$0xff]  }
 0x1bd   :  { %6136 = vmatpush3.bf16.msra.mxu1 %v6848_v59  ;;  %v6918_v59 = vld [vmem:[#allocation2 + $0xc20] ss:$12 sps:$4 sm:$0xff]  }
 0x1be   :  { %4302 = vmatpush1.bf16.msra.mxu0 %v6844_v48  ;;  %6137 = vmatprep.subr.bf16.mxu1 %v6852_v61  ;;  %v6914_v48 = vld [vmem:[#allocation2 + $0xc18] ss:$12 sps:$4 sm:$0xff]  }
 0x1bf   :  { %4303 = vmatprep.subr.bf16.mxu0 %v6851_v60  ;;  %v6921_v60 = vld [vmem:[#allocation2 + $0xc34] ss:$12 sps:$4 sm:$0xff]   ;;  %v6922_v61 = vld [vmem:[#allocation2 + $0xcf8] ss:$12 sps:$4 sm:$0xff]  }
 0x1c1   :  { %6138 = vmatpush3.bf16.msra.mxu1 %v6853_v46  ;;  %v6923_v46 = vld [vmem:[#allocation2 + $0xc38] ss:$12 sps:$4 sm:$0xff]  }
 0x1c2   :  { %4304 = vmatpush1.bf16.msra.mxu0 %v6849_v62  ;;  %6139 = vmatprep.subr.bf16.mxu1 %v6857_v0  ;;  %v6919_v62 = vld [vmem:[#allocation2 + $0xc30] ss:$12 sps:$4 sm:$0xff]   ;;  %v921_v0 = vlaneseq }
 0x1c3   :  { %4305 = vmatprep.subr.bf16.mxu0 %v6856_v63  ;;  %v7565_v10 = vpop.f32.mrb[0].mxu1  ;;  %v6926_v63 = vld [vmem:[#allocation2 + $0xc4c] ss:$12 sps:$4 sm:$0xff]  }
 0x1c4   :  { %v7567_v9 = vpop.f32.mrb[1].mxu1 }
 0x1c5   :  { %6140 = vmatpush3.bf16.msra.mxu1 %v6858_v2  ;;  %v4087_v35 = vpop.f32.mrb[2].mxu1 }
 0x1c6   :  { %4306 = vmatpush1.bf16.msra.mxu0 %v6854_v1  ;;  %6141 = vmatprep.subr.bf16.mxu1 %v6862_v4  ;;  %v4088_v16 = vpop.f32.mrb[3].mxu1  ;;  %v6927_v1 = vld [vmem:[#allocation2 + $0xd10] ss:$12 sps:$4 sm:$0xff]   ;;  %v6929_v35 = vld [vmem:[#allocation2 + $0xc60] ss:$12 sps:$4 sm:$0xff]  }
 0x1c7   :  { %4307 = vmatprep.subr.bf16.mxu0 %v6861_v3  ;;  %v6924_v3 = vld [vmem:[#allocation2 + $0xc48] ss:$12 sps:$4 sm:$0xff]   ;;  %v6928_v4 = vld [vmem:[#allocation2 + $0xc50] ss:$12 sps:$4 sm:$0xff]  }
 0x1c9   :  { %6142 = vmatpush3.bf16.msra.mxu1 %v6863_v6 }
 0x1ca   :  { %4308 = vmatpush1.bf16.msra.mxu0 %v6859_v5  ;;  %6143 = vmatprep.subr.bf16.mxu1 %v6867_v8  ;;  %v7577_v5 = vshrl.u32 %v921_v0, 7  ;;  %v6932_v8 = vld [vmem:[#allocation2 + $0xd28] ss:$12 sps:$4 sm:$0xff]   ;;  %v6974_v0 = vld [vmem:[#allocation2 + $0xd38] ss:$12 sps:$4 sm:$0xff]  }
 0x1cb   :  { %4309 = vmatprep.subr.bf16.mxu0 %v6866_v7  ;;  %v6931_v7 = vld [vmem:[#allocation2 + $0xc64] ss:$12 sps:$4 sm:$0xff]  }
 0x1cc   :  { %v931_v16 = vsub.s32 2, %v7577_v5 }
 0x1cd   :  { %6144 = vmatpush3.bf16.msra.mxu1 %v6868_v13  ;;  %v6933_v13 = vld [vmem:[#allocation2 + $0xc68] ss:$12 sps:$4 sm:$0xff]  }
 0x1ce   :  { %4310 = vmatpush1.bf16.msra.mxu0 %v6864_v12  ;;  %6151 = vmatprep.subr.bf16.mxu1 %v6872_v15  ;;  %v6936_v15 = vld [vmem:[#allocation2 + $0xc7c] ss:$12 sps:$4 sm:$0xff]  }
 0x1cf   :  { %4311 = vmatprep.subr.bf16.mxu0 %v6871_v14 }
 0x1d0   :  { %4773 = vmatmul.mubr.bf16.vlgmr.msra.gmra.mrb[28].mxu1 %v7554_v45  ;;  %v6906_v45 = vld [vmem:[#allocation2 + $0xbec] ss:$12 sps:$4 sm:$0xff]  }
 0x1d1   :  { %6152 = vmatpush3.bf16.msra.mxu1 %v6873_v17  ;;  %4812 = vmatprep.mubr.bf16.mxu1 %v7559_v52  ;;  %v6912_v52 = vld [vmem:[#allocation2 + $0xcc8] ss:$12 sps:$4 sm:$0xff]   ;;  %v6937_v17 = vld [vmem:[#allocation2 + $0xd40] ss:$12 sps:$4 sm:$0xff]  }
 0x1d2   :  { %4312 = vmatpush1.bf16.msra.mxu0 %v6869_v11  ;;  %6153 = vmatprep.subr.bf16.mxu1 %v6877_v39  ;;  %v6938_v39 = vld [vmem:[#allocation2 + $0xc80] ss:$12 sps:$4 sm:$0xff]  }
 0x1d3   :  { %4313 = vmatprep.subr.bf16.mxu0 %v6876_v18  ;;  %v6934_v18 = vld [vmem:[#allocation2 + $0xc78] ss:$12 sps:$4 sm:$0xff]  }
 0x1d5   :  { %6154 = vmatpush3.bf16.msra.mxu1 %v6878_v20  ;;  %v6941_v20 = vld [vmem:[#allocation2 + $0xc94] ss:$12 sps:$4 sm:$0xff]  }
 0x1d6   :  { %4314 = vmatpush1.bf16.msra.mxu0 %v6874_v19  ;;  %6155 = vmatprep.subr.bf16.mxu1 %v6882_v23  ;;  %v919_v19 = vld [vmem:[#allocation4] sm:$0x7]  ;;  %v6942_v23 = vld [vmem:[#allocation2 + $0xd58] ss:$12 sps:$4 sm:$0xff]  }
 0x1d7   :  { %4315 = vmatprep.subr.bf16.mxu0 %v6881_v31  ;;  %v932_v31 = vrot.slane %v919_v19, %v931_v16  ;;  %v6984_v16 = vld [vmem:[#allocation2 + $0xd68] ss:$12 sps:$4 sm:$0xff]  }
 0x1d8   :  { %v6992_v19 = vld [vmem:[#allocation2 + $0xfc8] ss:$12 sps:$4 sm:$0xff]  }
 0x1d9   :  { %6156 = vmatpush3.bf16.msra.mxu1 %v6883_v40  ;;  %v6939_v40 = vld [vmem:[#allocation2 + $0xc90] ss:$12 sps:$4 sm:$0xff]  }
 0x1da   :  { %4316 = vmatpush1.bf16.msra.mxu0 %v6879_v24  ;;  %6157 = vmatprep.subr.bf16.mxu1 %v6887_v26  ;;  %v6946_v26 = vld [vmem:[#allocation2 + $0xcac] ss:$12 sps:$4 sm:$0xff]  }
 0x1db   :  { %4317 = vmatprep.subr.bf16.mxu0 %v6886_v25  ;;  %v6943_v25 = vld [vmem:[#allocation2 + $0xc98] ss:$12 sps:$4 sm:$0xff]  }
 0x1dd   :  { %6158 = vmatpush3.bf16.msra.mxu1 %v6888_v28  ;;  %v6947_v28 = vld [vmem:[#allocation2 + $0xd70] ss:$12 sps:$4 sm:$0xff]  }
 0x1de   :  { %4318 = vmatpush1.bf16.msra.mxu0 %v6884_v27  ;;  %6159 = vmatprep.subr.bf16.mxu1 %v6892_v30  ;;  %v6944_v30 = vld [vmem:[#allocation2 + $0xca8] ss:$12 sps:$4 sm:$0xff]  }
 0x1df   :  { %4319 = vmatprep.subr.bf16.mxu0 %v6891_v29 }
 0x1e1   :  { %6160 = vmatpush3.bf16.msra.mxu1 %v6893_v33 }
 0x1e2   :  { %4320 = vmatpush1.bf16.msra.mxu0 %v6889_v32  ;;  %6161 = vmatprep.subr.bf16.mxu1 %v6897_v36  ;;  %v6948_v32 = vld [vmem:[#allocation2 + $0xcb0] ss:$12 sps:$4 sm:$0xff]  }
 0x1e3   :  { %4321 = vmatprep.subr.bf16.mxu0 %v6896_v34  ;;  %v6013_v2 = vpop.f32.mrb[4].mxu1  ;;  %v6951_v36 = vld [vmem:[#allocation2 + $0xcc4] ss:$12 sps:$4 sm:$0xff]  }
 0x1e4   :  { %v6014_v6 = vpop.f32.mrb[5].mxu1 }
 0x1e5   :  { %6162 = vmatpush3.bf16.msra.mxu1 %v6898_v38  ;;  %v6015_v12 = vadd.f32 %v6014_v6, %v6013_v2  ;;  %v6016_v14 = vpop.f32.mrb[6].mxu1  ;;  %v6981_v2 = vld [vmem:[#allocation2 + $0xd54] ss:$12 sps:$4 sm:$0xff]   ;;  %v6983_v6 = vld [vmem:[#allocation2 + $0xe18] ss:$12 sps:$4 sm:$0xff]  }
 0x1e6   :  { %4322 = vmatpush1.bf16.msra.mxu0 %v6894_v37  ;;  %6163 = vmatprep.subr.bf16.mxu1 %v6902_v43  ;;  %v6017_v11 = vpop.f32.mrb[7].mxu1  ;;  %v119_v37 = vld [vmem:[%s7665_s0 + $0x80] sm:$0xff]  ;;  %v6987_v14 = vld [vmem:[#allocation2 + $0xef0] ss:$12 sps:$4 sm:$0xff]  }
 0x1e7   :  { %4323 = vmatprep.subr.bf16.mxu0 %v6901_v42  ;;  %v4535_v27 = vadd.f32 %v6015_v12, %v932_v31  ;;  %v6952_v42 = vld [vmem:[#allocation2 + $0xe48] ss:$12 sps:$4 sm:$0xff]   ;;  %v6988_v11 = vld [vmem:[#allocation2 + $0xe30] ss:$12 sps:$4 sm:$0xff]   ;;  %v6989_v31 = vld [vmem:[#allocation2 + $0xd80] ss:$12 sps:$4 sm:$0xff]  }
 0x1e9   :  { %6164 = vmatpush3.bf16.msra.mxu1 %v6903_v44  ;;  %v7585_v44 = vpack.c.bf16 %v119_v37, %v119_v37  ;;  %v7004_v37 = vld [vmem:[#allocation2 + $0xdc8] ss:$12 sps:$4 sm:$0xff]  }
 0x1ea   :  { %4324 = vmatpush1.bf16.msra.mxu0 %v6899_v21  ;;  %6165 = vmatprep.subr.bf16.mxu1 %v6907_v47  ;;  %v6949_v21 = vld [vmem:[#allocation2 + $0xcc0] ss:$12 sps:$4 sm:$0xff]   ;;  %v6953_v47 = vld [vmem:[#allocation2 + $0xd88] ss:$12 sps:$4 sm:$0xff]  }
 0x1eb   :  { %4325 = vmatprep.subr.bf16.mxu0 %v6906_v45  ;;  %v122_v45 = vld [vmem:[%s7665_s0 + $0x98] sm:$0xff] }
 0x1ed   :  { %6166 = vmatpush3.bf16.msra.mxu1 %v6908_v50  ;;  %v6957_v50 = vld [vmem:[#allocation2 + $0xe60] ss:$12 sps:$4 sm:$0xff]  }
 0x1ee   :  { %4326 = vmatpush1.bf16.msra.mxu0 %v6904_v49  ;;  %6173 = vmatprep.subr.bf16.mxu1 %v6912_v52  ;;  %v6956_v49 = vld [vmem:[#allocation2 + $0xcdc] ss:$12 sps:$4 sm:$0xff]   ;;  %v6958_v52 = vld [vmem:[#allocation2 + $0xda0] ss:$12 sps:$4 sm:$0xff]  }
 0x1ef   :  { %4336 = vmatprep.subr.bf16.mxu0 %v6911_v51  ;;  %v7590_v51 = vpack.c.bf16 %v122_v45, %v122_v45  ;;  %v7016_v45 = vld [vmem:[#allocation2 + $0xdfc] ss:$12 sps:$4 sm:$0xff]  }
 0x1f0   :  { %4813 = vmatmul.mubr.bf16.vlgmr.msra.gmra.mrb[32].mxu1 %v141_v22 }
 0x1f1   :  { %4328 = vmatmul.mubr.bf16.vlgmr.msra.gmra.mrb[0].mxu0 %v141_v22  ;;  %6174 = vmatpush3.bf16.msra.mxu1 %v6913_v56  ;;  %v6962_v22 = vld [vmem:[#allocation2 + $0xe78] ss:$12 sps:$4 sm:$0xff]  }
 0x1f2   :  { %4337 = vmatpush1.bf16.msra.mxu0 %v6909_v54  ;;  %6175 = vmatprep.subr.bf16.mxu1 %v6917_v58  ;;  %v6961_v54 = vld [vmem:[#allocation2 + $0xcf4] ss:$12 sps:$4 sm:$0xff]   ;;  %v6963_v56 = vld [vmem:[#allocation2 + $0xdb8] ss:$12 sps:$4 sm:$0xff]   ;;  %v6967_v58 = vld [vmem:[#allocation2 + $0xe90] ss:$12 sps:$4 sm:$0xff]  }
 0x1f3   :  { %4338 = vmatprep.subr.bf16.mxu0 %v6916_v57  ;;  %4852 = vmatprep.mubr.bf16.mxu1 %v144_v41  ;;  %v6966_v57 = vld [vmem:[#allocation2 + $0xd0c] ss:$12 sps:$4 sm:$0xff]  }
 0x1f4   :  { %4368 = vmatprep.mubr.bf16.mxu0 %v144_v41  ;;  %v6964_v41 = vld [vmem:[#allocation2 + $0xd08] ss:$12 sps:$4 sm:$0xff]  }
 0x1f5   :  { %6176 = vmatpush3.bf16.msra.mxu1 %v6918_v59  ;;  %v6971_v59 = vld [vmem:[#allocation2 + $0xd24] ss:$12 sps:$4 sm:$0xff]  }
 0x1f6   :  { %4339 = vmatpush1.bf16.msra.mxu0 %v6914_v48  ;;  %6177 = vmatprep.subr.bf16.mxu1 %v6922_v61  ;;  %v6968_v48 = vld [vmem:[#allocation2 + $0xdd0] ss:$12 sps:$4 sm:$0xff]   ;;  %v6969_v61 = vld [vmem:[#allocation2 + $0xd20] ss:$12 sps:$4 sm:$0xff]  }
 0x1f7   :  { %4340 = vmatprep.subr.bf16.mxu0 %v6921_v60  ;;  %v6972_v60 = vld [vmem:[#allocation2 + $0xea8] ss:$12 sps:$4 sm:$0xff]  }
 0x1f9   :  { %6178 = vmatpush3.bf16.msra.mxu1 %v6923_v46  ;;  %v6976_v46 = vld [vmem:[#allocation2 + $0xd3c] ss:$12 sps:$4 sm:$0xff]  }
 0x1fa   :  { %4341 = vmatpush1.bf16.msra.mxu0 %v6919_v62  ;;  %6179 = vmatprep.subr.bf16.mxu1 %v6927_v1  ;;  %v6973_v62 = vld [vmem:[#allocation2 + $0xde8] ss:$12 sps:$4 sm:$0xff]   ;;  %v6978_v1 = vld [vmem:[#allocation2 + $0xe00] ss:$12 sps:$4 sm:$0xff]  }
 0x1fb   :  { %4342 = vmatprep.subr.bf16.mxu0 %v6926_v63  ;;  %v6977_v63 = vld [vmem:[#allocation2 + $0xec0] ss:$12 sps:$4 sm:$0xff]  }
 0x1fd   :  { %6180 = vmatpush3.bf16.msra.mxu1 %v6928_v4  ;;  %v6979_v4 = vld [vmem:[#allocation2 + $0xd50] ss:$12 sps:$4 sm:$0xff]  }
 0x1fe   :  { %4343 = vmatpush1.bf16.msra.mxu0 %v6924_v3  ;;  %6181 = vmatprep.subr.bf16.mxu1 %v6932_v8  ;;  %v6982_v3 = vld [vmem:[#allocation2 + $0xed8] ss:$12 sps:$4 sm:$0xff]  }
 0x1ff   :  { %4344 = vmatprep.subr.bf16.mxu0 %v6931_v7  ;;  %v6986_v8 = vld [vmem:[#allocation2 + $0xd6c] ss:$12 sps:$4 sm:$0xff]  }
 0x201   :  { %6182 = vmatpush3.bf16.msra.mxu1 %v6933_v13 }
 0x202   :  { %4345 = vmatpush1.bf16.msra.mxu0 %v6929_v35  ;;  %6183 = vmatprep.subr.bf16.mxu1 %v6937_v17 }
 0x203   :  { %4346 = vmatprep.subr.bf16.mxu0 %v6936_v15  ;;  %v6035_v24 = vpop.f32.mrb[8].mxu1 }
 0x204   :  { %v6036_v29 = vpop.f32.mrb[9].mxu1 }
 0x205   :  { %6184 = vmatpush3.bf16.msra.mxu1 %v6938_v39  ;;  %v6037_v33 = vadd.f32 %v6036_v29, %v6035_v24  ;;  %v6038_v34 = vpop.f32.mrb[10].mxu1  ;;  %v121_v39 = vld [vmem:[%s7665_s0 + $0x90] sm:$0xff] }
 0x206   :  { %4347 = vmatpush1.bf16.msra.mxu0 %v6934_v18  ;;  %6185 = vmatprep.subr.bf16.mxu1 %v6942_v23  ;;  %v6039_v43 = vpop.f32.mrb[11].mxu1  ;;  %v6991_v18 = vld [vmem:[#allocation2 + $0xd84] ss:$12 sps:$4 sm:$0xff]   ;;  %v6993_v23 = vld [vmem:[#allocation2 + $0xf08] ss:$12 sps:$4 sm:$0xff]   ;;  %v7603_v24 = vpack.c.bf16 %v121_v39, %v121_v39 }
 0x207   :  { %4348 = vmatprep.subr.bf16.mxu0 %v6941_v20  ;;  %v7583_v38 = vadd.f32 %v6037_v33, %v4535_v27  ;;  %v124_v20 = vld [vmem:[%s7665_s0 + $0xa8] sm:$0xff]  ;;  %v7001_v29 = vld [vmem:[#allocation2 + $0xdb4] ss:$12 sps:$4 sm:$0xff]   ;;  %v7003_v33 = vld [vmem:[#allocation2 + $0xf38] ss:$12 sps:$4 sm:$0xff]  }
 0x208   :  { %v6998_v27 = vld [vmem:[#allocation2 + $0xf20] ss:$12 sps:$4 sm:$0xff]   ;;  %v7012_v43 = vld [vmem:[#allocation2 + $0x1028] ss:$12 sps:$4 sm:$0xff]   ;;  %v7051_v39 = vld [vmem:[#allocation2 + $0xea4] ss:$12 sps:$4 sm:$0xff]  }
 0x209   :  { %6186 = vmatpush3.bf16.msra.mxu1 %v6943_v25  ;;  %v6997_v25 = vld [vmem:[#allocation2 + $0xfe0] ss:$12 sps:$4 sm:$0xff]  }
 0x20a   :  { %4349 = vmatpush1.bf16.msra.mxu0 %v6939_v40  ;;  %6187 = vmatprep.subr.bf16.mxu1 %v6947_v28  ;;  %v6996_v40 = vld [vmem:[#allocation2 + $0xd9c] ss:$12 sps:$4 sm:$0xff]   ;;  %v7605_v28 = vpack.c.bf16 %v124_v20, %v124_v20  ;;  %v7006_v34 = vld [vmem:[#allocation2 + $0xdcc] ss:$12 sps:$4 sm:$0xff]  }
 0x20b   :  { %4350 = vmatprep.subr.bf16.mxu0 %v6946_v26  ;;  %v6994_v26 = vld [vmem:[#allocation2 + $0xd98] ss:$12 sps:$4 sm:$0xff]   ;;  %v7049_v20 = vld [vmem:[#allocation2 + $0xea0] ss:$12 sps:$4 sm:$0xff]  }
 0x20d   :  { %6188 = vmatpush3.bf16.msra.mxu1 %v6948_v32  ;;  %v6999_v32 = vld [vmem:[#allocation2 + $0xdb0] ss:$12 sps:$4 sm:$0xff]  }
 0x20e   :  { %4351 = vmatpush1.bf16.msra.mxu0 %v6944_v30  ;;  %6195 = vmatprep.subr.bf16.mxu1 %v6952_v42  ;;  %v7002_v30 = vld [vmem:[#allocation2 + $0xff8] ss:$12 sps:$4 sm:$0xff]  }
 0x20f   :  { %4352 = vmatprep.subr.bf16.mxu0 %v6951_v36  ;;  %v7007_v36 = vld [vmem:[#allocation2 + $0x1010] ss:$12 sps:$4 sm:$0xff]  }
 0x210   :  { %4853 = vmatmul.mubr.bf16.vlgmr.msra.gmra.mrb[36].mxu1 %v7585_v44  ;;  %v7011_v42 = vld [vmem:[#allocation2 + $0xde4] ss:$12 sps:$4 sm:$0xff]  }
 0x211   :  { %6196 = vmatpush3.bf16.msra.mxu1 %v6953_v47  ;;  %4892 = vmatprep.mubr.bf16.mxu1 %v7590_v51  ;;  %v7017_v47 = vld [vmem:[#allocation2 + $0x1040] ss:$12 sps:$4 sm:$0xff]  }
 0x212   :  { %4353 = vmatpush1.bf16.msra.mxu0 %v6949_v21  ;;  %6197 = vmatprep.subr.bf16.mxu1 %v6957_v50  ;;  %v7009_v21 = vld [vmem:[#allocation2 + $0xde0] ss:$12 sps:$4 sm:$0xff]  }
 0x213   :  { %4354 = vmatprep.subr.bf16.mxu0 %v6956_v49  ;;  %v7014_v49 = vld [vmem:[#allocation2 + $0xdf8] ss:$12 sps:$4 sm:$0xff]   ;;  %v7018_v50 = vld [vmem:[#allocation2 + $0xf80] ss:$12 sps:$4 sm:$0xff]  }
 0x215   :  { %6198 = vmatpush3.bf16.msra.mxu1 %v6958_v52 }
 0x216   :  { %4355 = vmatpush1.bf16.msra.mxu0 %v6954_v53  ;;  %6199 = vmatprep.subr.bf16.mxu1 %v6962_v22  ;;  %v7022_v53 = vld [vmem:[#allocation2 + $0x1058] ss:$12 sps:$4 sm:$0xff]   ;;  %v7019_v22 = vld [vmem:[#allocation2 + $0xe10] ss:$12 sps:$4 sm:$0xff]  }
 0x217   :  { %4356 = vmatprep.subr.bf16.mxu0 %v6961_v54 }
 0x219   :  { %6200 = vmatpush3.bf16.msra.mxu1 %v6963_v56 }
 0x21a   :  { %4357 = vmatpush1.bf16.msra.mxu0 %v6959_v55  ;;  %6201 = vmatprep.subr.bf16.mxu1 %v6967_v58  ;;  %v7023_v55 = vld [vmem:[#allocation2 + $0xf98] ss:$12 sps:$4 sm:$0xff]  }
 0x21b   :  { %4358 = vmatprep.subr.bf16.mxu0 %v6966_v57  ;;  %v7026_v58 = vld [vmem:[#allocation2 + $0xe2c] ss:$12 sps:$4 sm:$0xff]  }
 0x21d   :  { %6202 = vmatpush3.bf16.msra.mxu1 %v6968_v48 }
 0x21e   :  { %4359 = vmatpush1.bf16.msra.mxu0 %v6964_v41  ;;  %6203 = vmatprep.subr.bf16.mxu1 %v6972_v60  ;;  %v7027_v41 = vld [vmem:[#allocation2 + $0x1070] ss:$12 sps:$4 sm:$0xff]   ;;  %v7024_v60 = vld [vmem:[#allocation2 + $0xe28] ss:$12 sps:$4 sm:$0xff]  }
 0x21f   :  { %4360 = vmatprep.subr.bf16.mxu0 %v6971_v59 }
 0x221   :  { %6204 = vmatpush3.bf16.msra.mxu1 %v6973_v62  ;;  %v123_v62 = vld [vmem:[%s7665_s0 + $0xa0] sm:$0xff] }
 0x222   :  { %4361 = vmatpush1.bf16.msra.mxu0 %v6969_v61  ;;  %6205 = vmatprep.subr.bf16.mxu1 %v6977_v63  ;;  %v7028_v61 = vld [vmem:[#allocation2 + $0xfb0] ss:$12 sps:$4 sm:$0xff]   ;;  %v7032_v63 = vld [vmem:[#allocation2 + $0x1148] ss:$12 sps:$4 sm:$0xff]  }
 0x223   :  { %4362 = vmatprep.subr.bf16.mxu0 %v6976_v46  ;;  %v6057_v7 = vpop.f32.mrb[12].mxu1  ;;  %v7031_v46 = vld [vmem:[#allocation2 + $0xe44] ss:$12 sps:$4 sm:$0xff]  }
 0x224   :  { %v6058_v12 = vpop.f32.mrb[13].mxu1 }
 0x225   :  { %6206 = vmatpush3.bf16.msra.mxu1 %v6978_v1  ;;  %v6059_v35 = vadd.f32 %v6058_v12, %v6057_v7  ;;  %v6060_v13 = vpop.f32.mrb[14].mxu1  ;;  %v126_v1 = vld [vmem:[%s7665_s0 + $0xb8] sm:$0xff]  ;;  %v7038_v12 = vld [vmem:[#allocation2 + $0x10a0] ss:$12 sps:$4 sm:$0xff]  }
 0x226   :  { %4363 = vmatpush1.bf16.msra.mxu0 %v6974_v0  ;;  %6207 = vmatprep.subr.bf16.mxu1 %v6982_v3  ;;  %v6061_v15 = vpop.f32.mrb[15].mxu1  ;;  %v7617_v0 = vpack.c.bf16 %v123_v62, %v123_v62  ;;  %v7033_v3 = vld [vmem:[#allocation2 + $0x1088] ss:$12 sps:$4 sm:$0xff]   ;;  %v7622_v7 = vpack.c.bf16 %v126_v1, %v126_v1  ;;  %v7042_v13 = vld [vmem:[#allocation2 + $0x1178] ss:$12 sps:$4 sm:$0xff]  }
 0x227   :  { %4364 = vmatprep.subr.bf16.mxu0 %v6981_v2  ;;  %v7595_v17 = vadd.f32 %v6059_v35, %v7583_v38  ;;  %v7008_v38 = vld [vmem:[#allocation2 + $0xf50] ss:$12 sps:$4 sm:$0xff]   ;;  %v7029_v2 = vld [vmem:[#allocation2 + $0xe40] ss:$12 sps:$4 sm:$0xff]   ;;  %v7043_v15 = vld [vmem:[#allocation2 + $0x10b8] ss:$12 sps:$4 sm:$0xff]  }
 0x228   :  { %v7041_v35 = vld [vmem:[#allocation2 + $0xe74] ss:$12 sps:$4 sm:$0xff]  }
 0x229   :  { %6208 = vmatpush3.bf16.msra.mxu1 %v6983_v6  ;;  %v7037_v6 = vld [vmem:[#allocation2 + $0x1160] ss:$12 sps:$4 sm:$0xff]  }
 0x22a   :  { %4365 = vmatpush1.bf16.msra.mxu0 %v6979_v4  ;;  %6209 = vmatprep.subr.bf16.mxu1 %v6987_v14  ;;  %v7036_v4 = vld [vmem:[#allocation2 + $0xe5c] ss:$12 sps:$4 sm:$0xff]  }
 0x22b   :  { %4366 = vmatprep.subr.bf16.mxu0 %v6986_v8  ;;  %v7034_v8 = vld [vmem:[#allocation2 + $0xe58] ss:$12 sps:$4 sm:$0xff]   ;;  %v7039_v14 = vld [vmem:[#allocation2 + $0xe70] ss:$12 sps:$4 sm:$0xff]  }
 0x22d   :  { %6210 = vmatpush3.bf16.msra.mxu1 %v6988_v11  ;;  %v7047_v11 = vld [vmem:[#allocation2 + $0x1190] ss:$12 sps:$4 sm:$0xff]  }
 0x22e   :  { %4367 = vmatpush1.bf16.msra.mxu0 %v6984_v16  ;;  %6217 = vmatprep.subr.bf16.mxu1 %v6992_v19  ;;  %v7046_v16 = vld [vmem:[#allocation2 + $0xe8c] ss:$12 sps:$4 sm:$0xff]   ;;  %v7052_v19 = vld [vmem:[#allocation2 + $0x11a8] ss:$12 sps:$4 sm:$0xff]  }
 0x22f   :  { %4377 = vmatprep.subr.bf16.mxu0 %v6991_v18  ;;  %v7048_v18 = vld [vmem:[#allocation2 + $0x10d0] ss:$12 sps:$4 sm:$0xff]  }
 0x230   :  { %4893 = vmatmul.mubr.bf16.vlgmr.msra.gmra.mrb[40].mxu1 %v7603_v24 }
 0x231   :  { %4369 = vmatmul.mubr.bf16.vlgmr.msra.gmra.mrb[0].mxu0 %v7585_v44  ;;  %6218 = vmatpush3.bf16.msra.mxu1 %v6993_v23  ;;  %v7013_v44 = vld [vmem:[#allocation2 + $0xf68] ss:$12 sps:$4 sm:$0xff]  }
 0x232   :  { %4378 = vmatpush1.bf16.msra.mxu0 %v6989_v31  ;;  %6219 = vmatprep.subr.bf16.mxu1 %v6997_v25  ;;  %v7053_v31 = vld [vmem:[#allocation2 + $0x10e8] ss:$12 sps:$4 sm:$0xff]   ;;  %v7054_v25 = vld [vmem:[#allocation2 + $0xeb8] ss:$12 sps:$4 sm:$0xff]  }
 0x233   :  { %4379 = vmatprep.subr.bf16.mxu0 %v6996_v40  ;;  %4932 = vmatprep.mubr.bf16.mxu1 %v7605_v28  ;;  %v7056_v23 = vld [vmem:[#allocation2 + $0xebc] ss:$12 sps:$4 sm:$0xff]   ;;  %v7057_v40 = vld [vmem:[#allocation2 + $0x11c0] ss:$12 sps:$4 sm:$0xff]  }
 0x234   :  { %4409 = vmatprep.mubr.bf16.mxu0 %v7590_v51  ;;  %v7021_v51 = vld [vmem:[#allocation2 + $0xe14] ss:$12 sps:$4 sm:$0xff]  }
 0x235   :  { %6220 = vmatpush3.bf16.msra.mxu1 %v6998_v27  ;;  %v7061_v27 = vld [vmem:[#allocation2 + $0xed4] ss:$12 sps:$4 sm:$0xff]  }
 0x236   :  { %4380 = vmatpush1.bf16.msra.mxu0 %v6994_v26  ;;  %6221 = vmatprep.subr.bf16.mxu1 %v7002_v30  ;;  %v7058_v26 = vld [vmem:[#allocation2 + $0x1100] ss:$12 sps:$4 sm:$0xff]  }
 0x237   :  { %4381 = vmatprep.subr.bf16.mxu0 %v7001_v29  ;;  %v7062_v29 = vld [vmem:[#allocation2 + $0x11d8] ss:$12 sps:$4 sm:$0xff]  }
 0x239   :  { %6222 = vmatpush3.bf16.msra.mxu1 %v7003_v33  ;;  %v7059_v33 = vld [vmem:[#allocation2 + $0xed0] ss:$12 sps:$4 sm:$0xff]  }
 0x23a   :  { %4382 = vmatpush1.bf16.msra.mxu0 %v6999_v32  ;;  %6223 = vmatprep.subr.bf16.mxu1 %v7007_v36 }
 0x23b   :  { %4383 = vmatprep.subr.bf16.mxu0 %v7006_v34  ;;  %v7063_v34 = vld [vmem:[#allocation2 + $0x1118] ss:$12 sps:$4 sm:$0xff]  }
 0x23d   :  { %6224 = vmatpush3.bf16.msra.mxu1 %v7008_v38  ;;  %v7066_v38 = vld [vmem:[#allocation2 + $0xeec] ss:$12 sps:$4 sm:$0xff]  }
 0x23e   :  { %4384 = vmatpush1.bf16.msra.mxu0 %v7004_v37  ;;  %6225 = vmatprep.subr.bf16.mxu1 %v7012_v43 }
 0x23f   :  { %4385 = vmatprep.subr.bf16.mxu0 %v7011_v42  ;;  %v7067_v42 = vld [vmem:[#allocation2 + $0x11f0] ss:$12 sps:$4 sm:$0xff]  }
 0x241   :  { %6226 = vmatpush3.bf16.msra.mxu1 %v7013_v44  ;;  %v7064_v44 = vld [vmem:[#allocation2 + $0xee8] ss:$12 sps:$4 sm:$0xff]  }
 0x242   :  { %4386 = vmatpush1.bf16.msra.mxu0 %v7009_v21  ;;  %6227 = vmatprep.subr.bf16.mxu1 %v7017_v47  ;;  %v125_v47 = vld [vmem:[%s7665_s0 + $0xb0] sm:$0xff] }
 0x243   :  { %4387 = vmatprep.subr.bf16.mxu0 %v7016_v45  ;;  %v6079_v52 = vpop.f32.mrb[16].mxu1  ;;  %v7068_v45 = vld [vmem:[#allocation2 + $0x1130] ss:$12 sps:$4 sm:$0xff]  }
 0x244   :  { %v6080_v54 = vpop.f32.mrb[17].mxu1 }
 0x245   :  { %6228 = vmatpush3.bf16.msra.mxu1 %v7018_v50  ;;  %v6081_v56 = vadd.f32 %v6080_v54, %v6079_v52  ;;  %v6082_v57 = vpop.f32.mrb[18].mxu1  ;;  %v7630_v50 = vpack.c.bf16 %v125_v47, %v125_v47  ;;  %v7072_v52 = vld [vmem:[#allocation2 + $0xf18] ss:$12 sps:$4 sm:$0xff]   ;;  %v7077_v54 = vld [vmem:[#allocation2 + $0xf34] ss:$12 sps:$4 sm:$0xff]  }
 0x246   :  { %4388 = vmatpush1.bf16.msra.mxu0 %v7014_v49  ;;  %6229 = vmatprep.subr.bf16.mxu1 %v7022_v53  ;;  %v6083_v48 = vpop.f32.mrb[19].mxu1  ;;  %v7071_v49 = vld [vmem:[#allocation2 + $0xf04] ss:$12 sps:$4 sm:$0xff]   ;;  %v7074_v53 = vld [vmem:[#allocation2 + $0xf1c] ss:$12 sps:$4 sm:$0xff]  }
 0x247   :  { %4389 = vmatprep.subr.bf16.mxu0 %v7021_v51  ;;  %v7612_v59 = vadd.f32 %v6081_v56, %v7595_v17  ;;  %v7044_v17 = vld [vmem:[#allocation2 + $0xe88] ss:$12 sps:$4 sm:$0xff]   ;;  %v7069_v51 = vld [vmem:[#allocation2 + $0xf00] ss:$12 sps:$4 sm:$0xff]   ;;  %v7083_v57 = vld [vmem:[#allocation2 + $0xf64] ss:$12 sps:$4 sm:$0xff]  }
 0x248   :  { %v7078_v56 = vld [vmem:[#allocation2 + $0xf48] ss:$12 sps:$4 sm:$0xff]  }
 0x249   :  { %6230 = vmatpush3.bf16.msra.mxu1 %v7023_v55  ;;  %v7080_v55 = vld [vmem:[#allocation2 + $0xf4c] ss:$12 sps:$4 sm:$0xff]   ;;  %v7089_v48 = vld [vmem:[#allocation2 + $0xf94] ss:$12 sps:$4 sm:$0xff]  }
 0x24a   :  { %4390 = vmatpush1.bf16.msra.mxu0 %v7019_v22  ;;  %6231 = vmatprep.subr.bf16.mxu1 %v7027_v41  ;;  %v7075_v22 = vld [vmem:[#allocation2 + $0xf30] ss:$12 sps:$4 sm:$0xff]  }
 0x24b   :  { %4391 = vmatprep.subr.bf16.mxu0 %v7026_v58  ;;  %v7081_v58 = vld [vmem:[#allocation2 + $0xf60] ss:$12 sps:$4 sm:$0xff]   ;;  %v7086_v41 = vld [vmem:[#allocation2 + $0xf7c] ss:$12 sps:$4 sm:$0xff]  }
 0x24d   :  { %6232 = vmatpush3.bf16.msra.mxu1 %v7028_v61 }
 0x24e   :  { %4392 = vmatpush1.bf16.msra.mxu0 %v7024_v60  ;;  %6239 = vmatprep.subr.bf16.mxu1 %v7032_v63  ;;  %v7087_v60 = vld [vmem:[#allocation2 + $0xf90] ss:$12 sps:$4 sm:$0xff]  }
 0x24f   :  { %4393 = vmatprep.subr.bf16.mxu0 %v7031_v46  ;;  %v7092_v46 = vld [vmem:[#allocation2 + $0xfac] ss:$12 sps:$4 sm:$0xff]  }
 0x250   :  { %4933 = vmatmul.mubr.bf16.vlgmr.msra.gmra.mrb[44].mxu1 %v7617_v0 }
 0x251   :  { %6240 = vmatpush3.bf16.msra.mxu1 %v7033_v3  ;;  %4972 = vmatprep.mubr.bf16.mxu1 %v7622_v7  ;;  %v7095_v3 = vld [vmem:[#allocation2 + $0xfc4] ss:$12 sps:$4 sm:$0xff]  }
 0x252   :  { %4394 = vmatpush1.bf16.msra.mxu0 %v7029_v2  ;;  %6241 = vmatprep.subr.bf16.mxu1 %v7037_v6  ;;  %v7090_v2 = vld [vmem:[#allocation2 + $0xfa8] ss:$12 sps:$4 sm:$0xff]  }
 0x253   :  { %4395 = vmatprep.subr.bf16.mxu0 %v7036_v4  ;;  %v7093_v4 = vld [vmem:[#allocation2 + $0xfc0] ss:$12 sps:$4 sm:$0xff]   ;;  %v7098_v6 = vld [vmem:[#allocation2 + $0xfdc] ss:$12 sps:$4 sm:$0xff]  }
 0x255   :  { %6242 = vmatpush3.bf16.msra.mxu1 %v7038_v12  ;;  %v7101_v12 = vld [vmem:[#allocation2 + $0xff4] ss:$12 sps:$4 sm:$0xff]  }
 0x256   :  { %4396 = vmatpush1.bf16.msra.mxu0 %v7034_v8  ;;  %6243 = vmatprep.subr.bf16.mxu1 %v7042_v13  ;;  %v7096_v8 = vld [vmem:[#allocation2 + $0xfd8] ss:$12 sps:$4 sm:$0xff]  }
 0x257   :  { %4397 = vmatprep.subr.bf16.mxu0 %v7041_v35  ;;  %v7099_v35 = vld [vmem:[#allocation2 + $0xff0] ss:$12 sps:$4 sm:$0xff]   ;;  %v7104_v13 = vld [vmem:[#allocation2 + $0x100c] ss:$12 sps:$4 sm:$0xff]  }
 0x259   :  { %6244 = vmatpush3.bf16.msra.mxu1 %v7043_v15  ;;  %v7107_v15 = vld [vmem:[#allocation2 + $0x1024] ss:$12 sps:$4 sm:$0xff]  }
 0x25a   :  { %4398 = vmatpush1.bf16.msra.mxu0 %v7039_v14  ;;  %6245 = vmatprep.subr.bf16.mxu1 %v7047_v11  ;;  %v7102_v14 = vld [vmem:[#allocation2 + $0x1008] ss:$12 sps:$4 sm:$0xff]  }
 0x25b   :  { %4399 = vmatprep.subr.bf16.mxu0 %v7046_v16  ;;  %v7105_v16 = vld [vmem:[#allocation2 + $0x1020] ss:$12 sps:$4 sm:$0xff]   ;;  %v7110_v11 = vld [vmem:[#allocation2 + $0x103c] ss:$12 sps:$4 sm:$0xff]  }
 0x25d   :  { %6246 = vmatpush3.bf16.msra.mxu1 %v7048_v18  ;;  %v7113_v18 = vld [vmem:[#allocation2 + $0x1054] ss:$12 sps:$4 sm:$0xff]  }
 0x25e   :  { %4400 = vmatpush1.bf16.msra.mxu0 %v7044_v17  ;;  %6247 = vmatprep.subr.bf16.mxu1 %v7052_v19  ;;  %v7108_v17 = vld [vmem:[#allocation2 + $0x1038] ss:$12 sps:$4 sm:$0xff]  }
 0x25f   :  { %4401 = vmatprep.subr.bf16.mxu0 %v7051_v39 }
 0x261   :  { %6248 = vmatpush3.bf16.msra.mxu1 %v7053_v31  ;;  %v7111_v31 = vld [vmem:[#allocation2 + $0x1050] ss:$12 sps:$4 sm:$0xff]  }
 0x262   :  { %4402 = vmatpush1.bf16.msra.mxu0 %v7049_v20  ;;  %6249 = vmatprep.subr.bf16.mxu1 %v7057_v40  ;;  %v7116_v40 = vld [vmem:[#allocation2 + $0x106c] ss:$12 sps:$4 sm:$0xff]  }
 0x263   :  { %4403 = vmatprep.subr.bf16.mxu0 %v7056_v23  ;;  %v6101_v30 = vpop.f32.mrb[20].mxu1 }
 0x264   :  { %v6102_v32 = vpop.f32.mrb[21].mxu1 }
 0x265   :  { %6250 = vmatpush3.bf16.msra.mxu1 %v7058_v26  ;;  %v6103_v36 = vadd.f32 %v6102_v32, %v6101_v30  ;;  %v6104_v37 = vpop.f32.mrb[22].mxu1  ;;  %v7117_v30 = vld [vmem:[#allocation2 + $0x1080] ss:$12 sps:$4 sm:$0xff]   ;;  %v7122_v32 = vld [vmem:[#allocation2 + $0x109c] ss:$12 sps:$4 sm:$0xff]  }
 0x266   :  { %4404 = vmatpush1.bf16.msra.mxu0 %v7054_v25  ;;  %6251 = vmatprep.subr.bf16.mxu1 %v7062_v29  ;;  %v6105_v43 = vpop.f32.mrb[23].mxu1  ;;  %v7119_v29 = vld [vmem:[#allocation2 + $0x1084] ss:$12 sps:$4 sm:$0xff]   ;;  %v7128_v37 = vld [vmem:[#allocation2 + $0x10cc] ss:$12 sps:$4 sm:$0xff]  }
 0x267   :  { %4405 = vmatprep.subr.bf16.mxu0 %v7061_v27  ;;  %v4695_v21 = vadd.f32 %v6103_v36, %v7612_v59  ;;  %v7114_v27 = vld [vmem:[#allocation2 + $0x1068] ss:$12 sps:$4 sm:$0xff]   ;;  %v7123_v36 = vld [vmem:[#allocation2 + $0x10b0] ss:$12 sps:$4 sm:$0xff]   ;;  %v7129_v43 = vld [vmem:[#allocation2 + $0x10e0] ss:$12 sps:$4 sm:$0xff]  }
 0x269   :  { %6252 = vmatpush3.bf16.msra.mxu1 %v7063_v34  ;;  %v7125_v34 = vld [vmem:[#allocation2 + $0x10b4] ss:$12 sps:$4 sm:$0xff]  }
 0x26a   :  { %4406 = vmatpush1.bf16.msra.mxu0 %v7059_v33  ;;  %6253 = vmatprep.subr.bf16.mxu1 %v7067_v42  ;;  %v7120_v33 = vld [vmem:[#allocation2 + $0x1098] ss:$12 sps:$4 sm:$0xff]  }
 0x26b   :  { %4407 = vmatprep.subr.bf16.mxu0 %v7066_v38  ;;  %v7126_v38 = vld [vmem:[#allocation2 + $0x10c8] ss:$12 sps:$4 sm:$0xff]   ;;  %v7131_v42 = vld [vmem:[#allocation2 + $0x10e4] ss:$12 sps:$4 sm:$0xff]  }
 0x26d   :  { %6254 = vmatpush3.bf16.msra.mxu1 %v7068_v45 }
 0x26e   :  { %4408 = vmatpush1.bf16.msra.mxu0 %v7064_v44  ;;  %v7137_v44 = vld [vmem:[#allocation2 + $0x1114] ss:$12 sps:$4 sm:$0xff]  }
 0x26f   :  { %4418 = vmatprep.subr.bf16.mxu0 %v7071_v49  ;;  %v7135_v49 = vld [vmem:[#allocation2 + $0x1110] ss:$12 sps:$4 sm:$0xff]  }
 0x270   :  { %4973 = vmatmul.mubr.bf16.vlgmr.msra.gmra.mrb[48].mxu1 %v7630_v50 }
 0x271   :  { %4410 = vmatmul.mubr.bf16.vlgmr.msra.gmra.mrb[0].mxu0 %v7603_v24  ;;  %v7084_v24 = vld [vmem:[#allocation2 + $0xf78] ss:$12 sps:$4 sm:$0xff]  }
 0x272   :  { %4419 = vmatpush1.bf16.msra.mxu0 %v7069_v51  ;;  %4450 = vmatprep.mubr.bf16.mxu0 %v7605_v28 }
 0x273   :  { %4420 = vmatprep.subr.bf16.mxu0 %v7074_v53  ;;  %v7140_v53 = vld [vmem:[#allocation2 + $0x112c] ss:$12 sps:$4 sm:$0xff]  }
 0x276   :  { %4421 = vmatpush1.bf16.msra.mxu0 %v7072_v52 }
 0x277   :  { %4422 = vmatprep.subr.bf16.mxu0 %v7077_v54 }
 0x27a   :  { %4423 = vmatpush1.bf16.msra.mxu0 %v7075_v22  ;;  %v7138_v22 = vld [vmem:[#allocation2 + $0x1128] ss:$12 sps:$4 sm:$0xff]  }
 0x27b   :  { %4424 = vmatprep.subr.bf16.mxu0 %v7080_v55  ;;  %v7143_v55 = vld [vmem:[#allocation2 + $0x1144] ss:$12 sps:$4 sm:$0xff]  }
 0x27e   :  { %4425 = vmatpush1.bf16.msra.mxu0 %v7078_v56  ;;  %v7165_v56 = vld [vmem:[#allocation6 + $0x40] sm:$0xff]  }
 0x27f   :  { %4426 = vmatprep.subr.bf16.mxu0 %v7083_v57  ;;  %v7166_v57 = vld [vmem:[#allocation6] sm:$0xff]   ;;  %6261 = vmatprep.subr.bf16.mxu1 %v7165_v56 }
 0x280   :  { %6262 = vmatpush3.bf16.msra.mxu1 %v7166_v57 }
 0x282   :  { %4427 = vmatpush1.bf16.msra.mxu0 %v7081_v58  ;;  %v7167_v58 = vld [vmem:[#allocation6 + $0x48] sm:$0xff]  }
 0x283   :  { %4428 = vmatprep.subr.bf16.mxu0 %v7086_v41  ;;  %v6123_v59 = vpop.f32.mrb[24].mxu1  ;;  %v7141_v41 = vld [vmem:[#allocation2 + $0x1140] ss:$12 sps:$4 sm:$0xff]   ;;  %6263 = vmatprep.subr.bf16.mxu1 %v7167_v58 }
 0x284   :  { %v6124_v28 = vpop.f32.mrb[25].mxu1 }
 0x285   :  { %v6125_v61 = vadd.f32 %v6124_v28, %v6123_v59  ;;  %v6126_v62 = vpop.f32.mrb[26].mxu1  ;;  %v7169_v59 = vld [vmem:[#allocation6 + $0x50] sm:$0xff]  }
 0x286   :  { %4429 = vmatpush1.bf16.msra.mxu0 %v7084_v24  ;;  %v6127_v63 = vpop.f32.mrb[27].mxu1  ;;  %v7146_v24 = vld [vmem:[#allocation2 + $0x115c] ss:$12 sps:$4 sm:$0xff]   ;;  %v7144_v28 = vld [vmem:[#allocation2 + $0x1158] ss:$12 sps:$4 sm:$0xff]  }
 0x287   :  { %4430 = vmatprep.subr.bf16.mxu0 %v7089_v48  ;;  %v4735_v1 = vadd.f32 %v6125_v61, %v4695_v21  ;;  %v7134_v21 = vld [vmem:[#allocation2 + $0x10fc] ss:$12 sps:$4 sm:$0xff]   ;;  %v7168_v48 = vld [vmem:[#allocation6 + $0x8] sm:$0xff]   ;;  %v7170_v61 = vld [vmem:[#allocation6 + $0x10] sm:$0xff]  }
 0x288   :  { %6264 = vmatpush3.bf16.msra.mxu1 %v7168_v48  ;;  %v7171_v62 = vld [vmem:[#allocation6 + $0x58] sm:$0xff]   ;;  %v7152_v63 = vld [vmem:[#allocation2 + $0x118c] ss:$12 sps:$4 sm:$0xff]  }
 0x289   :  { %6265 = vmatprep.subr.bf16.mxu1 %v7169_v59 }
 0x28a   :  { %4431 = vmatpush1.bf16.msra.mxu0 %v7087_v60  ;;  %v7149_v60 = vld [vmem:[#allocation2 + $0x1174] ss:$12 sps:$4 sm:$0xff]  }
 0x28b   :  { %4432 = vmatprep.subr.bf16.mxu0 %v7092_v46  ;;  %v7147_v46 = vld [vmem:[#allocation2 + $0x1170] ss:$12 sps:$4 sm:$0xff]  }
 0x28c   :  { %6266 = vmatpush3.bf16.msra.mxu1 %v7170_v61 }
 0x28d   :  { %6267 = vmatprep.subr.bf16.mxu1 %v7171_v62 }
 0x28e   :  { %4433 = vmatpush1.bf16.msra.mxu0 %v7090_v2  ;;  %v7173_v2 = vld [vmem:[#allocation6 + $0x60] sm:$0xff]  }
 0x28f   :  { %4434 = vmatprep.subr.bf16.mxu0 %v7095_v3  ;;  %v7150_v3 = vld [vmem:[#allocation2 + $0x1188] ss:$12 sps:$4 sm:$0xff]  }
 0x292   :  { %4435 = vmatpush1.bf16.msra.mxu0 %v7093_v4  ;;  %v7155_v4 = vld [vmem:[#allocation2 + $0x11a4] ss:$12 sps:$4 sm:$0xff]  }
 0x293   :  { %4436 = vmatprep.subr.bf16.mxu0 %v7098_v6  ;;  %v7174_v6 = vld [vmem:[#allocation6 + $0x20] sm:$0xff]  }
 0x296   :  { %4437 = vmatpush1.bf16.msra.mxu0 %v7096_v8  ;;  %v7175_v8 = vld [vmem:[#allocation6 + $0x68] sm:$0xff]  }
 0x297   :  { %4438 = vmatprep.subr.bf16.mxu0 %v7101_v12  ;;  %v7153_v12 = vld [vmem:[#allocation2 + $0x11a0] ss:$12 sps:$4 sm:$0xff]  }
 0x29a   :  { %4439 = vmatpush1.bf16.msra.mxu0 %v7099_v35  ;;  %v7158_v35 = vld [vmem:[#allocation2 + $0x11bc] ss:$12 sps:$4 sm:$0xff]  }
 0x29b   :  { %4440 = vmatprep.subr.bf16.mxu0 %v7104_v13  ;;  %v7176_v13 = vld [vmem:[#allocation6 + $0x28] sm:$0xff]  }
 0x29e   :  { %4441 = vmatpush1.bf16.msra.mxu0 %v7102_v14  ;;  %v7156_v14 = vld [vmem:[#allocation2 + $0x11b8] ss:$12 sps:$4 sm:$0xff]  }
 0x29f   :  { %4442 = vmatprep.subr.bf16.mxu0 %v7107_v15  ;;  %v7161_v15 = vld [vmem:[#allocation2 + $0x11d4] ss:$12 sps:$4 sm:$0xff]  }
 0x2a2   :  { %4443 = vmatpush1.bf16.msra.mxu0 %v7105_v16 }
 0x2a3   :  { %4444 = vmatprep.subr.bf16.mxu0 %v7110_v11  ;;  %v6145_v39 = vpop.f32.mrb[28].mxu1 }
 0x2a4   :  { %v6146_v19 = vpop.f32.mrb[29].mxu1 }
 0x2a5   :  { %v6147_v20 = vadd.f32 %v6146_v19, %v6145_v39  ;;  %v6148_v23 = vpop.f32.mrb[30].mxu1  ;;  %v7164_v19 = vld [vmem:[#allocation2 + $0x11ec] ss:$12 sps:$4 sm:$0xff]  }
 0x2a6   :  { %4445 = vmatpush1.bf16.msra.mxu0 %v7108_v17  ;;  %v6149_v25 = vpop.f32.mrb[31].mxu1  ;;  %v7162_v23 = vld [vmem:[#allocation2 + $0x11e8] ss:$12 sps:$4 sm:$0xff]  }
 0x2a7   :  { %4446 = vmatprep.subr.bf16.mxu0 %v7113_v18  ;;  %v4775_v26 = vadd.f32 %v6147_v20, %v4735_v1  ;;  %v7172_v1 = vld [vmem:[#allocation6 + $0x18] sm:$0xff]  }
 0x2a8   :  { %6268 = vmatpush3.bf16.msra.mxu1 %v7172_v1  ;;  %v7159_v18 = vld [vmem:[#allocation2 + $0x11d0] ss:$12 sps:$4 sm:$0xff]   ;;  %v7185_v1 = vld [vmem:[#allocation6 + $0xa0] sm:$0xff]  }
 0x2a9   :  { %6269 = vmatprep.subr.bf16.mxu1 %v7173_v2  ;;  %v7186_v2 = vld [vmem:[#allocation6 + $0xa8] sm:$0xff]  }
 0x2aa   :  { %4447 = vmatpush1.bf16.msra.mxu0 %v7111_v31 }
 0x2ab   :  { %4448 = vmatprep.subr.bf16.mxu0 %v7116_v40 }
 0x2ac   :  { %6270 = vmatpush3.bf16.msra.mxu1 %v7174_v6 }
 0x2ad   :  { %6271 = vmatprep.subr.bf16.mxu1 %v7175_v8 }
 0x2ae   :  { %4449 = vmatpush1.bf16.msra.mxu0 %v7114_v27 }
 0x2af   :  { %4459 = vmatprep.subr.bf16.mxu0 %v7119_v29 }
 0x2b0   :  { %6272 = vmatpush3.bf16.msra.mxu1 %v7176_v13  ;;  %v7191_v13 = vld [vmem:[#allocation9 + $0x10] sm:$0xff]  }
 0x2b1   :  { %4451 = vmatmul.mubr.bf16.vlgmr.msra.gmra.mrb[0].mxu0 %v7617_v0  ;;  %v7132_v0 = vld [vmem:[#allocation2 + $0x10f8] ss:$12 sps:$4 sm:$0xff]  }
 0x2b2   :  { %4460 = vmatpush1.bf16.msra.mxu0 %v7117_v30  ;;  %4491 = vmatprep.mubr.bf16.mxu0 %v7622_v7 }
 0x2b3   :  { %4461 = vmatprep.subr.bf16.mxu0 %v7122_v32 }
 0x2b6   :  { %4462 = vmatpush1.bf16.msra.mxu0 %v7120_v33 }
 0x2b7   :  { %4463 = vmatprep.subr.bf16.mxu0 %v7125_v34 }
 0x2ba   :  { %4464 = vmatpush1.bf16.msra.mxu0 %v7123_v36 }
 0x2bb   :  { %4465 = vmatprep.subr.bf16.mxu0 %v7128_v37 }
 0x2be   :  { %4466 = vmatpush1.bf16.msra.mxu0 %v7126_v38 }
 0x2bf   :  { %4467 = vmatprep.subr.bf16.mxu0 %v7131_v42  ;;  %v7177_v42 = vld [vmem:[#allocation6 + $0x70] sm:$0xff]  }
 0x2c0   :  { %6273 = vmatprep.subr.bf16.mxu1 %v7177_v42 }
 0x2c2   :  { %4468 = vmatpush1.bf16.msra.mxu0 %v7129_v43  ;;  %v7178_v43 = vld [vmem:[#allocation6 + $0x30] sm:$0xff]  }
 0x2c3   :  { %4469 = vmatprep.subr.bf16.mxu0 %v7134_v21  ;;  %v6167_v45 = vpop.f32.mrb[32].mxu1  ;;  %6274 = vmatpush3.bf16.msra.mxu1 %v7178_v43 }
 0x2c4   :  { %v6168_v7 = vpop.f32.mrb[33].mxu1 }
 0x2c5   :  { %v6169_v47 = vadd.f32 %v6168_v7, %v6167_v45  ;;  %v6170_v51 = vpop.f32.mrb[34].mxu1  ;;  %v7180_v7 = vld [vmem:[#allocation6 + $0x38] sm:$0xff]  }
 0x2c6   :  { %4470 = vmatpush1.bf16.msra.mxu0 %v7132_v0  ;;  %v6171_v52 = vpop.f32.mrb[35].mxu1  ;;  %v7348_v51 = vmov 0.0  }
 0x2c7   :  { %4471 = vmatprep.subr.bf16.mxu0 %v7137_v44  ;;  %v4815_v54 = vadd.f32 %v6169_v47, %v4775_v26  ;;  %v927_v52 = vsub.s32 1, %v7577_v5 }
 0x2ca   :  { %4472 = vmatpush1.bf16.msra.mxu0 %v7135_v49 }
 0x2cb   :  { %4473 = vmatprep.subr.bf16.mxu0 %v7140_v53  ;;  %v923_v53 = vsub.s32 0, %v7577_v5  ;;  %v7182_v5 = vld [vmem:[#allocation6 + $0x88] sm:$0xff]  }
 0x2ce   :  { %4474 = vmatpush1.bf16.msra.mxu0 %v7138_v22 }
 0x2cf   :  { %4475 = vmatprep.subr.bf16.mxu0 %v7143_v55 }
 0x2d2   :  { %4476 = vmatpush1.bf16.msra.mxu0 %v7141_v41 }
 0x2d3   :  { %4477 = vmatprep.subr.bf16.mxu0 %v7146_v24 }
 0x2d6   :  { %4478 = vmatpush1.bf16.msra.mxu0 %v7144_v28 }
 0x2d7   :  { %4479 = vmatprep.subr.bf16.mxu0 %v7149_v60 }
 0x2da   :  { %4480 = vmatpush1.bf16.msra.mxu0 %v7147_v46  ;;  %v7181_v46 = vld [vmem:[#allocation6 + $0x80] sm:$0xff]  }
 0x2db   :  { %4481 = vmatprep.subr.bf16.mxu0 %v7152_v63 }
 0x2de   :  { %4482 = vmatpush1.bf16.msra.mxu0 %v7150_v3  ;;  %v7187_v3 = vld [vmem:[#allocation6 + $0xb0] sm:$0xff]  }
 0x2df   :  { %4483 = vmatprep.subr.bf16.mxu0 %v7155_v4  ;;  %v7188_v4 = vld [vmem:[#allocation6 + $0xb8] sm:$0xff]  }
 0x2e2   :  { %4484 = vmatpush1.bf16.msra.mxu0 %v7153_v12  ;;  %v7189_v12 = vld [vmem:[#allocation9] sm:$0xff]  }
 0x2e3   :  { %4485 = vmatprep.subr.bf16.mxu0 %v7158_v35  ;;  %v6189_v16 = vpop.f32.mrb[36].mxu1  ;;  %v7190_v35 = vld [vmem:[#allocation9 + $0x8] sm:$0xff]  }
 0x2e4   :  { %v6190_v11 = vpop.f32.mrb[37].mxu1 }
 0x2e5   :  { %v6191_v17 = vadd.f32 %v6190_v11, %v6189_v16  ;;  %v6192_v39 = vpop.f32.mrb[38].mxu1  ;;  %v7194_v16 = vld [vmem:[#allocation9 + $0x28] sm:$0xff]   ;;  %v7195_v11 = vld [vmem:[#allocation9 + $0x30] sm:$0xff]  }
 0x2e6   :  { %4486 = vmatpush1.bf16.msra.mxu0 %v7156_v14  ;;  %v6193_v20 = vpop.f32.mrb[39].mxu1  ;;  %v7192_v14 = vld [vmem:[#allocation9 + $0x18] sm:$0xff]  }
 0x2e7   :  { %4487 = vmatprep.subr.bf16.mxu0 %v7161_v15  ;;  %v4855_v31 = vadd.f32 %v6191_v17, %v4815_v54  ;;  %v7197_v54 = vld [vmem:[#allocation4] sm:$0x7]  ;;  %v7193_v15 = vld [vmem:[#allocation9 + $0x20] sm:$0xff]  }
 0x2e8   :  { %v924_v22 = vrot.slane %v7197_v54, %v923_v53  ;;  %v928_v55 = vrot.slane %v7197_v54, %v927_v52  ;;  %v7196_v17 = vld [vmem:[#allocation9 + $0x38] sm:$0xff]  }
 0x2ea   :  { %4488 = vmatpush1.bf16.msra.mxu0 %v7159_v18  ;;  %v6341_v56 = vadd.f32 %v7565_v10, %v924_v22  ;;  %v6343_v57 = vadd.f32 %v7567_v9, %v928_v55  ;;  %v7183_v10 = vld [vmem:[#allocation6 + $0x90] sm:$0xff]   ;;  %v7184_v9 = vld [vmem:[#allocation6 + $0x98] sm:$0xff]  }
 0x2eb   :  { %4489 = vmatprep.subr.bf16.mxu0 %v7164_v19 }
 0x2ee   :  { %4490 = vmatpush1.bf16.msra.mxu0 %v7162_v23  ;;  %v5963_v23 = vld [vmem:[#allocation7] ss:$0 sm:$0xff] }
 0x2f1   :  { %4492 = vmatmul.mubr.bf16.vlgmr.msra.gmra.mrb[0].mxu0 %v7630_v50  ;;  %v7179_v50 = vld [vmem:[#allocation6 + $0x78] sm:$0xff]  }
 0x2f2   :  { %6275 = vmatprep.subr.bf16.mxu1 %v7179_v50 }
 0x2f3   :  { %6276 = vmatpush3.bf16.msra.mxu1 %v7180_v7 }
 0x2f4   :  { %6301 = vmatprep.subr.bf16.mxu1 %v7348_v51 }
 0x303   :  { %v6211_v40 = vpop.f32.mrb[40].mxu1 }
 0x304   :  { %v6212_v25 = vpop.f32.mrb[41].mxu1 }
 0x305   :  { %v6213_v26 = vadd.f32 %v6212_v25, %v6211_v40  ;;  %v6214_v27 = vpop.f32.mrb[42].mxu1 }
 0x306   :  { %v6215_v29 = vpop.f32.mrb[43].mxu1 }
 0x307   :  { %v4895_v30 = vadd.f32 %v6213_v26, %v4855_v31 }
 0x323   :  { %v6233_v32 = vpop.f32.mrb[44].mxu1 }
 0x324   :  { %v6234_v33 = vpop.f32.mrb[45].mxu1 }
 0x325   :  { %v6235_v34 = vadd.f32 %v6234_v33, %v6233_v32  ;;  %v6236_v36 = vpop.f32.mrb[46].mxu1 }
 0x326   :  { %v6237_v37 = vpop.f32.mrb[47].mxu1 }
 0x327   :  { %v4935_v38 = vadd.f32 %v6235_v34, %v4895_v30  ;;  %v5988_v34 = vld [vmem:[#allocation10] ss:$0 sm:$0xff] }
 0x343   :  { %v6255_v21 = vpop.f32.mrb[48].mxu1 }
 0x344   :  { %v6256_v0 = vpop.f32.mrb[49].mxu1 }
 0x345   :  { %v6257_v44 = vadd.f32 %v6256_v0, %v6255_v21  ;;  %v6258_v45 = vpop.f32.mrb[50].mxu1 }
 0x346   :  { %v6259_v47 = vpop.f32.mrb[51].mxu1 }
 0x347   :  { %v4975_v49 = vadd.f32 %v6257_v44, %v4935_v38 }
 0x349   :  { %v4982_v6 = vmax.f32 %v4975_v49, 0.0 }
 0x34b   :  { %v4985_v8 = vpack.c.bf16 %v4982_v6, %v4982_v6 }
 0x3c4   :  { %v4493_v58 = vpop.f32.mrb[0].mxu0 }
 0x3c5   :  { %v6342_v41 = vadd.f32 %v6341_v56, %v4493_v58  ;;  %v4495_v24 = vpop.f32.mrb[1].mxu0 }
 0x3c6   :  { %v6344_v48 = vadd.f32 %v6343_v57, %v4495_v24  ;;  %v4497_v59 = vpop.f32.mrb[2].mxu0 }
 0x3c7   :  { %v4980_v28 = vmax.f32 %v6342_v41, 0.0  ;;  %v4498_v60 = vpop.f32.mrb[3].mxu0 }
 0x3c8   :  { %v4981_v61 = vmax.f32 %v6344_v48, 0.0 }
 0x3c9   :  { %v4983_v63 = vpack.c.bf16 %v4980_v28, %v4980_v28 }
 0x3ca   :  { %v4984_v62 = vpack.c.bf16 %v4981_v61, %v4981_v61 }
 0x3cc   :  { %5217 = vmatprep.mubr.bf16.mxu1 %v4984_v62 }
 0x3cd   :  { %5218 = vmatmul.mubr.bf16.vlgmr.msra.gmra.mrb[52].mxu1 %v4983_v63 }
 0x3ce   :  { %6302 = vmatpush3.bf16.msra.mxu1 %v7181_v46  ;;  %6317 = vmatprep.mubr.msk.bf16.mxu1 %vm7349_vm0, %v7348_v51 }
 0x3cf   :  { %6303 = vmatprep.subr.bf16.mxu1 %v7348_v51 }
 0x3d2   :  { %6304 = vmatpush3.bf16.msra.mxu1 %v7182_v5 }
 0x3d3   :  { %6305 = vmatprep.subr.bf16.mxu1 %v7348_v51 }
 0x3d6   :  { %6306 = vmatpush3.bf16.msra.mxu1 %v7183_v10 }
 0x3d7   :  { %6307 = vmatprep.subr.bf16.mxu1 %v7348_v51 }
 0x3da   :  { %6308 = vmatpush3.bf16.msra.mxu1 %v7184_v9 }
 0x3db   :  { %6309 = vmatprep.subr.bf16.mxu1 %v7348_v51 }
 0x3de   :  { %6310 = vmatpush3.bf16.msra.mxu1 %v7185_v1 }
 0x3df   :  { %6311 = vmatprep.subr.bf16.mxu1 %v7348_v51 }
 0x3e2   :  { %6312 = vmatpush3.bf16.msra.mxu1 %v7186_v2 }
 0x3e3   :  { %6313 = vmatprep.subr.bf16.mxu1 %v7348_v51 }
 0x3e6   :  { %6314 = vmatpush3.bf16.msra.mxu1 %v7187_v3 }
 0x3e7   :  { %6315 = vmatprep.subr.bf16.mxu1 %v7348_v51 }
 0x3ea   :  { %6316 = vmatpush3.bf16.msra.mxu1 %v7188_v4 }
 0x3eb   :  { %6321 = vmatprep.subr.bf16.mxu1 %v7348_v51 }
 0x3ed   :  { %6318 = vmatmul.mubr.bf16.vlgmr.msra.gmra.mrb[56].mxu1 %v4985_v8 }
 0x3ee   :  { %6337 = vmatprep.mubr.msk.bf16.mxu1 %vm7349_vm0, %v7348_v51  ;;  %6322 = vmatpush3.bf16.msra.mxu1 %v7189_v12 }
 0x3ef   :  { %6323 = vmatprep.subr.bf16.mxu1 %v7348_v51 }
 0x3f2   :  { %6324 = vmatpush3.bf16.msra.mxu1 %v7190_v35 }
 0x3f3   :  { %6325 = vmatprep.subr.bf16.mxu1 %v7348_v51 }
 0x3f6   :  { %6326 = vmatpush3.bf16.msra.mxu1 %v7191_v13 }
 0x3f7   :  { %6327 = vmatprep.subr.bf16.mxu1 %v7348_v51 }
 0x3fa   :  { %6328 = vmatpush3.bf16.msra.mxu1 %v7192_v14 }
 0x3fb   :  { %6329 = vmatprep.subr.bf16.mxu1 %v7348_v51 }
 0x3fe   :  { %6330 = vmatpush3.bf16.msra.mxu1 %v7193_v15 }
 0x3ff   :  { %6331 = vmatprep.subr.bf16.mxu1 %v7348_v51 }
 0x402   :  { %6332 = vmatpush3.bf16.msra.mxu1 %v7194_v16 }
 0x403   :  { %6333 = vmatprep.subr.bf16.mxu1 %v7348_v51 }
 0x406   :  { %6334 = vmatpush3.bf16.msra.mxu1 %v7195_v11 }
 0x407   :  { %6335 = vmatprep.subr.bf16.mxu1 %v7348_v51 }
 0x40a   :  { %6336 = vmatpush3.bf16.msra.mxu1 %v7196_v17 }
 0x4a0   :  { %v6277_v18 = vpop.f32.mrb[52].mxu1 }
 0x4a1   :  { %v6278_v39 = vpop.f32.mrb[53].mxu1 }
 0x4a2   :  { %v6279_v19 = vadd.f32 %v6278_v39, %v6277_v18  ;;  %v6280_v20 = vpop.f32.mrb[54].mxu1 }
 0x4a3   :  { %v6281_v31 = vpop.f32.mrb[55].mxu1 }
 0x4a4   :  { %v5220_v40 = vadd.f32 %v6279_v19, %v5963_v23 }
 0x4c0   :  { %v5259_v25 = vpop.f32.mrb[56].mxu1 }
 0x4c1   :  { %v5260_v26 = vadd.f32 %v5259_v25, %v5220_v40  ;;  %v6319_v27 = vpop.f32.mrb[57].mxu1 }
 0x4c2   :  { %v5262_v29 = vpop.f32.mrb[58].mxu1 }
 0x4c3   :  { %v5265_v30 = vmax.f32 %v5260_v26, 0.0  ;;  %v6320_v32 = vpop.f32.mrb[59].mxu1 }
 0x4c5   :  { %v5266_v33 = vpack.c.bf16 %v5265_v30, %v5265_v30 }
 0x4c7   :  { %6338 = vmatmul.mubr.bf16.vlgmr.msra.gmra.mrb[60].mxu1 %v5266_v33 }
 0x59a   :  { %v5372_v36 = vpop.f32.mrb[60].mxu1 }
 0x59b   :  { %v5373_v37 = vadd.f32 %v5988_v34, %v5372_v36  ;;  %v6339_v38 = vpop.f32.mrb[61].mxu1 }
 0x59c   :  { %v5375_v42 = vpop.f32.mrb[62].mxu1 }
 0x59d   :  { %5378 = vst [vmem:[%s7672_s7] sm:$0xff] %v5373_v37  ;;  %v6340_v43 = vpop.f32.mrb[63].mxu1 }
 0x59e   :  { %5383 = vsyncpa [#allocation3], 1 }
 0x59f   :  { %5384 = vsyncpa [#allocation5], 1 }
 0x5a0   :  { %5385 = vsyncpa [#allocation8], 1 }
 0x5a1   :  { %5386 = vsyncpa [#allocation11], 1 }

</bundles_post_ra>
